<compile_context>
chip_gen: v7x
topology: tpu7x:2x2x1
jax: 0.10.0
libtpu: 0.0.40
codegen_flags: <defaults>
</compile_context>

<pallas_src>
import functools
import math

import jax
import jax.numpy as jnp
from jax import lax
from jax.experimental import pallas as pl
from jax.experimental.pallas import tpu as pltpu


_LN_EPS = 1e-5  # nn.LayerNorm default


# ----------------------------------------------------------------------------
# Small helpers
# ----------------------------------------------------------------------------
def _softmax_rows(s):
    """Numerically stable row softmax in f32 (reciprocal goes to the EUP)."""
    p = jnp.exp(s - jnp.max(s, axis=-1, keepdims=True))
    return p * pl.reciprocal(jnp.sum(p, axis=-1, keepdims=True), approx=True)


def _layernorm(x, g, b, eps):
    mu = jnp.mean(x, axis=-1, keepdims=True)
    xc = x - mu
    var = jnp.mean(xc * xc, axis=-1, keepdims=True)
    return xc * lax.rsqrt(var + eps) * g + b


def _nbytes(shape, dtype):
    n = 1
    for s in shape:
        n *= int(s)
    return n * jnp.dtype(dtype).itemsize


def _vmem_limit(block_bytes, scratch=0):
    """Return an explicit vmem limit only if the scoped default is too small."""
    est = int((block_bytes + scratch) * 1.5)
    if est <= 16 * 1024 * 1024:
        return None                      # scoped defaults are plenty
    return min(est, 64 * 1024 * 1024)    # stay under the v7x physical ceiling


def _mk_params(dim_sem, vmem_limit):
    if vmem_limit is None:
        return pltpu.CompilerParams(dimension_semantics=dim_sem)
    return pltpu.CompilerParams(dimension_semantics=dim_sem,
                                vmem_limit_bytes=vmem_limit)


# ----------------------------------------------------------------------------
# Kernels
# ----------------------------------------------------------------------------
def _bma_stack_kernel(h0_ref, w_w_ref, w_m_ref, g_ref, b_ref,
                      out_ref, attn_ref, h_sc, *, seq_water, scale, eps):
    # Grid = (batch, layer). Hidden state stays resident in h_sc (VMEM scratch)
    # across the layer axis; the HBM output is written once, on the last layer.
    l = pl.program_id(1)
    n_layers = pl.num_programs(1)
    L = seq_water

    @pl.when(l == 0)
    def _():
        h_sc[...] = h0_ref[0].astype(jnp.float32)

    water = h_sc[pl.ds(0, L), :]                      # (L, D) f32
    mete = h_sc[pl.ds(L, L), :]
    water_b = water.astype(jnp.bfloat16)
    mete_b = mete.astype(jnp.bfloat16)

    # Weights are already bf16 (pre-cast at param build); f32 MXU accumulation.
    wq_w, wk_w, wv_w = w_w_ref[0, 0], w_w_ref[0, 1], w_w_ref[0, 2]
    wq_m, wk_m, wv_m = w_m_ref[0, 0], w_m_ref[0, 1], w_m_ref[0, 2]

    # Scale folded into Q (S x D multiply instead of S x S).
    q_w = jnp.dot(water_b, wq_w, preferred_element_type=jnp.float32) * scale
    k_w = jnp.dot(water_b, wk_w, preferred_element_type=jnp.float32)
    v_w = jnp.dot(water_b, wv_w, preferred_element_type=jnp.float32)
    q_m = jnp.dot(mete_b, wq_m, preferred_element_type=jnp.float32) * scale
    k_m = jnp.dot(mete_b, wk_m, preferred_element_type=jnp.float32)
    v_m = jnp.dot(mete_b, wv_m, preferred_element_type=jnp.float32)

    dn = (((1,), (1,)), ((), ()))                     # Q @ K^T w/o transpose

    # water attends to mete
    s_wm = lax.dot_general(q_w.astype(jnp.bfloat16), k_m.astype(jnp.bfloat16),
                           dn, preferred_element_type=jnp.float32)
    p_wm = _softmax_rows(s_wm)                        # (L, L) f32
    attn_ref[0, 0] = p_wm.astype(attn_ref.dtype)      # store before P·V cast
    water_new = jnp.dot(p_wm.astype(jnp.bfloat16), v_m.astype(jnp.bfloat16),
                        preferred_element_type=jnp.float32)

    # mete attends to water
    s_mw = lax.dot_general(q_m.astype(jnp.bfloat16), k_w.astype(jnp.bfloat16),
                           dn, preferred_element_type=jnp.float32)
    p_mw = _softmax_rows(s_mw)
    mete_new = jnp.dot(p_mw.astype(jnp.bfloat16), v_w.astype(jnp.bfloat16),
                       preferred_element_type=jnp.float32)

    # Direct half-slab writes into the resident hidden state (no concatenate).
    h_sc[pl.ds(0, L), :] = water_new
    h_sc[pl.ds(L, L), :] = mete_new

    @pl.when(l == n_layers - 1)
    def _():                                          # fused norm0 epilogue
        out_ref[0] = _layernorm(h_sc[...], g_ref[...], b_ref[...],
                                eps).astype(out_ref.dtype)


def _attn_stack_kernel(x0_ref, wqkv_ref, wo_ref, g_ref, b_ref,
                       out_ref, attn_ref, h_sc, *, scale, eps):
    # Grid = (batch, layer). Self-attention + out-proj + residual per layer,
    # norm1 fused into the last layer's epilogue.
    l = pl.program_id(1)
    n_layers = pl.num_programs(1)

    @pl.when(l == 0)
    def _():
        h_sc[...] = x0_ref[0].astype(jnp.float32)

    x = h_sc[...]                                     # (S, D) f32
    x_b = x.astype(jnp.bfloat16)
    wq, wk, wv = wqkv_ref[0, 0], wqkv_ref[0, 1], wqkv_ref[0, 2]

    q = jnp.dot(x_b, wq, preferred_element_type=jnp.float32) * scale
    k = jnp.dot(x_b, wk, preferred_element_type=jnp.float32)
    v = jnp.dot(x_b, wv, preferred_element_type=jnp.float32)

    dn = (((1,), (1,)), ((), ()))
    s = lax.dot_general(q.astype(jnp.bfloat16), k.astype(jnp.bfloat16),
                        dn, preferred_element_type=jnp.float32)
    p = _softmax_rows(s)                              # (S, S) f32
    attn_ref[0, 0] = p.astype(attn_ref.dtype)         # store before P·V cast
    ctx = jnp.dot(p.astype(jnp.bfloat16), v.astype(jnp.bfloat16),
                  preferred_element_type=jnp.float32)
    y = jnp.dot(ctx.astype(jnp.bfloat16), wo_ref[0],
                preferred_element_type=jnp.float32) + x   # fused residual
    h_sc[...] = y

    @pl.when(l == n_layers - 1)
    def _():                                          # fused norm1 epilogue
        out_ref[0] = _layernorm(y, g_ref[...], b_ref[...],
                                eps).astype(out_ref.dtype)


def _layernorm_kernel(x_ref, g_ref, b_ref, o_ref, *, eps):
    # Fallback standalone LayerNorm (only used if a layer list is empty).
    x = x_ref[0].astype(jnp.float32)
    o_ref[0] = _layernorm(x, g_ref[...], b_ref[...], eps).astype(o_ref.dtype)


# ----------------------------------------------------------------------------
# Pallas-call wrappers
# ----------------------------------------------------------------------------
def bma_stack(hidden, w_water, w_mete, gamma, beta, *, seq_water, eps=_LN_EPS):
    B, S, D = hidden.shape
    n_layers = int(w_water.shape[0])
    L = seq_water
    scale = 1.0 / math.sqrt(D)
    kernel = functools.partial(_bma_stack_kernel, seq_water=L, scale=scale,
                               eps=eps)

    block_bytes = 2 * (2 * _nbytes((1, S, D), hidden.dtype)
                       + 2 * _nbytes((1, 3, D, D), w_water.dtype)
                       + _nbytes((1, 1, L, L), jnp.float32)
                       + 2 * _nbytes((1, D), jnp.float32))
    vmem_limit = _vmem_limit(block_bytes, scratch=_nbytes((S, D), jnp.float32))

    out, attn = pl.pallas_call(
        kernel,
        out_shape=(jax.ShapeDtypeStruct((B, S, D), hidden.dtype),
                   jax.ShapeDtypeStruct((n_layers, B, L, L), jnp.float32)),
        grid=(B, n_layers),
        in_specs=[
            pl.BlockSpec((1, S, D), lambda b, l: (b, 0, 0)),
            pl.BlockSpec((1, 3, D, D), lambda b, l: (l, 0, 0, 0)),
            pl.BlockSpec((1, 3, D, D), lambda b, l: (l, 0, 0, 0)),
            pl.BlockSpec((1, D), lambda b, l: (0, 0)),
            pl.BlockSpec((1, D), lambda b, l: (0, 0)),
        ],
        out_specs=(
            # Same block index across the layer axis -> hidden stays in VMEM
            # for the whole stack and is written back once per batch element.
            pl.BlockSpec((1, S, D), lambda b, l: (b, 0, 0)),
            pl.BlockSpec((1, 1, L, L), lambda b, l: (l, b, 0, 0)),
        ),
        scratch_shapes=[pltpu.VMEM((S, D), jnp.float32)],
        compiler_params=_mk_params(("parallel", "arbitrary"), vmem_limit),
    )(hidden, w_water, w_mete, gamma, beta)
    return out, attn


def self_attn_stack(x, w_qkv, w_o, gamma, beta, *, eps=_LN_EPS):
    B, S, D = x.shape
    n_layers = int(w_qkv.shape[0])
    scale = 1.0 / math.sqrt(D)
    kernel = functools.partial(_attn_stack_kernel, scale=scale, eps=eps)

    block_bytes = 2 * (2 * _nbytes((1, S, D), x.dtype)
                       + _nbytes((1, 3, D, D), w_qkv.dtype)
                       + _nbytes((1, D, D), w_o.dtype)
                       + _nbytes((1, 1, S, S), jnp.float32)
                       + 2 * _nbytes((1, D), jnp.float32))
    vmem_limit = _vmem_limit(block_bytes, scratch=_nbytes((S, D), jnp.float32))

    out, attn = pl.pallas_call(
        kernel,
        out_shape=(jax.ShapeDtypeStruct((B, S, D), x.dtype),
                   jax.ShapeDtypeStruct((n_layers, B, S, S), jnp.float32)),
        grid=(B, n_layers),
        in_specs=[
            pl.BlockSpec((1, S, D), lambda b, l: (b, 0, 0)),
            pl.BlockSpec((1, 3, D, D), lambda b, l: (l, 0, 0, 0)),
            pl.BlockSpec((1, D, D), lambda b, l: (l, 0, 0)),
            pl.BlockSpec((1, D), lambda b, l: (0, 0)),
            pl.BlockSpec((1, D), lambda b, l: (0, 0)),
        ],
        out_specs=(
            pl.BlockSpec((1, S, D), lambda b, l: (b, 0, 0)),
            pl.BlockSpec((1, 1, S, S), lambda b, l: (l, b, 0, 0)),
        ),
        scratch_shapes=[pltpu.VMEM((S, D), jnp.float32)],
        compiler_params=_mk_params(("parallel", "arbitrary"), vmem_limit),
    )(x, w_qkv, w_o, gamma, beta)
    return out, attn


def layer_norm(x, gamma, beta, eps=_LN_EPS):
    B, S, D = x.shape
    kernel = functools.partial(_layernorm_kernel, eps=eps)
    return pl.pallas_call(
        kernel,
        out_shape=jax.ShapeDtypeStruct((B, S, D), x.dtype),
        grid=(B,),
        in_specs=[
            pl.BlockSpec((1, S, D), lambda b: (b, 0, 0)),
            pl.BlockSpec((1, D), lambda b: (0, 0)),
            pl.BlockSpec((1, D), lambda b: (0, 0)),
        ],
        out_specs=pl.BlockSpec((1, S, D), lambda b: (b, 0, 0)),
        compiler_params=pltpu.CompilerParams(dimension_semantics=("parallel",)),
    )(x, gamma, beta)


# ----------------------------------------------------------------------------
# Module forward (mirrors BMAttentionBlock.forward)
# ----------------------------------------------------------------------------
def bm_attention_block_forward(water_x, mete_x, params):
    L = water_x.shape[1]
    # Stacked [water ; mete] layout from the start == torch.cat(..., dim=1)
    # after the BMA stack (the explicit concat HBM round trip disappears).
    hidden = jnp.concatenate([water_x, mete_x], axis=1)   # (B, 2L, D)

    n_bma = int(params["w_water"].shape[0])
    if n_bma > 0:
        hidden, bma_attn_stacked = bma_stack(
            hidden, params["w_water"], params["w_mete"],
            params["norm0_g"], params["norm0_b"], seq_water=L)
        bma_attns = [bma_attn_stacked[i] for i in range(n_bma)]
    else:
        hidden = layer_norm(hidden, params["norm0_g"], params["norm0_b"])
        bma_attns = []

    n_attn = int(params["w_qkv"].shape[0])
    if n_attn > 0:
        hidden, attn_stacked = self_attn_stack(
            hidden, params["w_qkv"], params["w_o"],
            params["norm1_g"], params["norm1_b"])
        attns = [attn_stacked[i] for i in range(n_attn)]
    else:
        hidden = layer_norm(hidden, params["norm1_g"], params["norm1_b"])
        attns = []

    return hidden, bma_attns, attns


# ----------------------------------------------------------------------------
# Deterministic parameter init.
# Projection weights are stacked per layer as (n_layers, 3, D, D) = [Wq|Wk|Wv]
# and pre-cast to bf16 once (review: no per-grid-step weight casts / half DMA).
# ----------------------------------------------------------------------------
def init_params(key, d_model, n_bma_layers, n_attn_layers):
    def stack(k, n, m):
        w = (jax.random.normal(k, (n, m, d_model, d_model), jnp.float32)
             / math.sqrt(d_model))
        return w.astype(jnp.bfloat16)

    key, k1, k2, k3, k4 = jax.random.split(key, 5)
    return {
        "w_water": stack(k1, n_bma_layers, 3),   # [Wq_w | Wk_w | Wv_w] / layer
        "w_mete": stack(k2, n_bma_layers, 3),    # [Wq_m | Wk_m | Wv_m] / layer
        "w_qkv": stack(k3, n_attn_layers, 3),    # [Wq   | Wk   | Wv  ] / layer
        "w_o": (jax.random.normal(k4, (n_attn_layers, d_model, d_model),
                                  jnp.float32)
                / math.sqrt(d_model)).astype(jnp.bfloat16),
        "norm0_g": jnp.ones((1, d_model), jnp.float32),
        "norm0_b": jnp.zeros((1, d_model), jnp.float32),
        "norm1_g": jnp.ones((1, d_model), jnp.float32),
        "norm1_b": jnp.zeros((1, d_model), jnp.float32),
    }


if __name__ == "__main__":
    B, L, D = 2, 8, 32           # batch, seq per modality, hidden
    N_BMA, N_ATTN = 2, 2

    key = jax.random.PRNGKey(0)
    k_w, k_m, k_p = jax.random.split(key, 3)
    water_x = jax.random.normal(k_w, (B, L, D), jnp.float32)
    mete_x = jax.random.normal(k_m, (B, L, D), jnp.float32)
    params = init_params(k_p, D, N_BMA, N_ATTN)

    fwd = jax.jit(bm_attention_block_forward)
    hidden, bma_attns, attns = fwd(water_x, mete_x, params)
    jax.block_until_ready(hidden)
    for a in bma_attns + attns:
        jax.block_until_ready(a)

    assert hidden.shape == (B, 2 * L, D)
    assert len(bma_attns) == N_BMA and len(attns) == N_ATTN
    assert all(a.shape == (B, L, L) for a in bma_attns)
    assert all(a.shape == (B, 2 * L, 2 * L) for a in attns)
    assert bool(jnp.all(jnp.isfinite(hidden)))
    for a in bma_attns + attns:
        assert bool(jnp.all(jnp.isfinite(a)))
    print("KERNEL_OK")
</pallas_src>

<mosaic_0001>
module attributes {stable_mosaic.version = 11 : i64} {
  func.func @_attn_stack_kernel(%arg0: i32, %arg1: i32, %arg2: memref<1x16x32xf32, #tpu.memory_space<vmem>>, %arg3: memref<1x3x32x32xbf16, #tpu.memory_space<vmem>>, %arg4: memref<1x32x32xbf16, #tpu.memory_space<vmem>>, %arg5: memref<1x32xf32, #tpu.memory_space<vmem>>, %arg6: memref<1x32xf32, #tpu.memory_space<vmem>>, %arg7: memref<1x16x32xf32, #tpu.memory_space<vmem>>, %arg8: memref<1x1x16x16xf32, #tpu.memory_space<vmem>>, %arg9: memref<16x32xf32, #tpu.memory_space<vmem>>) attributes {dimension_semantics = [#tpu.dimension_semantics<parallel>, #tpu.dimension_semantics<arbitrary>], iteration_bounds = array<i64: 2, 2>, scalar_prefetch = 0 : i64, scratch_operands = 1 : i64, tpu.core_type = #tpu.core_type<tc>, window_params = [{transform_indices = @transform_0, window_bounds = array<i64: 1, 16, 32>}, {transform_indices = @transform_1, window_bounds = array<i64: 1, 3, 32, 32>}, {transform_indices = @transform_2, window_bounds = array<i64: 1, 32, 32>}, {pipeline_mode = #tpu.pipeline_mode<synchronous>, transform_indices = @transform_3, window_bounds = array<i64: 1, 32>}, {pipeline_mode = #tpu.pipeline_mode<synchronous>, transform_indices = @transform_4, window_bounds = array<i64: 1, 32>}, {transform_indices = @transform_5, window_bounds = array<i64: 1, 16, 32>}, {transform_indices = @transform_6, window_bounds = array<i64: 1, 1, 16, 16>}]} {
    %c0_i32 = arith.constant 0 : i32
    %0 = arith.cmpi eq, %arg1, %c0_i32 : i32
    %1 = arith.extui %0 : i1 to i32
    %c0_i32_0 = arith.constant 0 : i32
    %2 = arith.cmpi ne, %1, %c0_i32_0 : i32
    scf.if %2 {
      %c0_30 = arith.constant 0 : index
      %c0_31 = arith.constant 0 : index
      %c0_32 = arith.constant 0 : index
      %44 = vector.load %arg2[%c0_30, %c0_31, %c0_32] : memref<1x16x32xf32, #tpu.memory_space<vmem>>, vector<1x16x32xf32>
      %45 = vector.shape_cast %44 : vector<1x16x32xf32> to vector<16x32xf32>
      %c0_33 = arith.constant 0 : index
      %c0_34 = arith.constant 0 : index
      %46 = vector.load %arg9[%c0_33, %c0_34] : memref<16x32xf32, #tpu.memory_space<vmem>>, vector<16x32xf32>
      tpu.vector_store %arg9[%c0_33, %c0_34], %45 {strides = array<i32>} : memref<16x32xf32, #tpu.memory_space<vmem>>, vector<16x32xf32>,
    } else {
    }
    %c0 = arith.constant 0 : index
    %c0_1 = arith.constant 0 : index
    %3 = vector.load %arg9[%c0, %c0_1] : memref<16x32xf32, #tpu.memory_space<vmem>>, vector<16x32xf32>
    %4 = arith.truncf %3 : vector<16x32xf32> to vector<16x32xbf16>
    %c0_2 = arith.constant 0 : index
    %c0_3 = arith.constant 0 : index
    %c0_4 = arith.constant 0 : index
    %c0_5 = arith.constant 0 : index
    %5 = vector.load %arg3[%c0_2, %c0_3, %c0_4, %c0_5] : memref<1x3x32x32xbf16, #tpu.memory_space<vmem>>, vector<1x1x32x32xbf16>
    %6 = vector.shape_cast %5 : vector<1x1x32x32xbf16> to vector<32x32xbf16>
    %c0_6 = arith.constant 0 : index
    %c1 = arith.constant 1 : index
    %c0_7 = arith.constant 0 : index
    %c0_8 = arith.constant 0 : index
    %7 = vector.load %arg3[%c0_6, %c1, %c0_7, %c0_8] : memref<1x3x32x32xbf16, #tpu.memory_space<vmem>>, vector<1x1x32x32xbf16>
    %8 = vector.shape_cast %7 : vector<1x1x32x32xbf16> to vector<32x32xbf16>
    %c0_9 = arith.constant 0 : index
    %c2 = arith.constant 2 : index
    %c0_10 = arith.constant 0 : index
    %c0_11 = arith.constant 0 : index
    %9 = vector.load %arg3[%c0_9, %c2, %c0_10, %c0_11] : memref<1x3x32x32xbf16, #tpu.memory_space<vmem>>, vector<1x1x32x32xbf16>
    %10 = vector.shape_cast %9 : vector<1x1x32x32xbf16> to vector<32x32xbf16>
    %cst = arith.constant dense<0.000000e+00> : vector<16x32xf32>
    %11 = tpu.matmul %4, %6, %cst {dimension_numbers = #tpu.dot_dimension_numbers<[1], [0], [0], [1], [0, 0, 1, 1], [], []>} : vector<16x32xbf16>, vector<32x32xbf16>, vector<16x32xf32> -> vector<16x32xf32>
    %cst_12 = arith.constant 0.176776692 : f32
    %12 = vector.broadcast %cst_12 : f32 to vector<16x32xf32>
    %13 = arith.mulf %11, %12 : vector<16x32xf32>
    %cst_13 = arith.constant dense<0.000000e+00> : vector<16x32xf32>
    %14 = tpu.matmul %4, %8, %cst_13 {dimension_numbers = #tpu.dot_dimension_numbers<[1], [0], [0], [1], [0, 0, 1, 1], [], []>} : vector<16x32xbf16>, vector<32x32xbf16>, vector<16x32xf32> -> vector<16x32xf32>
    %cst_14 = arith.constant dense<0.000000e+00> : vector<16x32xf32>
    %15 = tpu.matmul %4, %10, %cst_14 {dimension_numbers = #tpu.dot_dimension_numbers<[1], [0], [0], [1], [0, 0, 1, 1], [], []>} : vector<16x32xbf16>, vector<32x32xbf16>, vector<16x32xf32> -> vector<16x32xf32>
    %16 = arith.truncf %13 : vector<16x32xf32> to vector<16x32xbf16>
    %17 = arith.truncf %14 : vector<16x32xf32> to vector<16x32xbf16>
    %cst_15 = arith.constant dense<0.000000e+00> : vector<16x16xf32>
    %18 = tpu.matmul %16, %17, %cst_15 {dimension_numbers = #tpu.dot_dimension_numbers<[1], [1], [0], [0], [0, 0, 1, 0], [], []>} : vector<16x32xbf16>, vector<16x32xbf16>, vector<16x16xf32> -> vector<16x16xf32>
    %cst_16 = arith.constant dense<0xFF800000> : vector<16xf32>
    %19 = vector.multi_reduction <maximumf>, %18, %cst_16 [1] : vector<16x16xf32> to vector<16xf32>
    %20 = vector.shape_cast %19 : vector<16xf32> to vector<16x1xf32>
    %21 = vector.broadcast %20 : vector<16x1xf32> to vector<16x16xf32>
    %22 = arith.subf %18, %21 : vector<16x16xf32>
    %23 = math.exp %22 : vector<16x16xf32>
    %cst_17 = arith.constant dense<0.000000e+00> : vector<16xf32>
    %24 = vector.multi_reduction <add>, %23, %cst_17 [1] : vector<16x16xf32> to vector<16xf32>
    %25 = vector.shape_cast %24 : vector<16xf32> to vector<16x1xf32>
    %26 = tpu.reciprocal %25 {approx = true} : vector<16x1xf32> -> vector<16x1xf32>
    %27 = vector.broadcast %26 : vector<16x1xf32> to vector<16x16xf32>
    %28 = arith.mulf %23, %27 : vector<16x16xf32>
    %c0_18 = arith.constant 0 : index
    %c0_19 = arith.constant 0 : index
    %c0_20 = arith.constant 0 : index
    %c0_21 = arith.constant 0 : index
    %29 = vector.load %arg8[%c0_18, %c0_19, %c0_20, %c0_21] : memref<1x1x16x16xf32, #tpu.memory_space<vmem>>, vector<1x1x16x16xf32>
    %30 = vector.shape_cast %29 : vector<1x1x16x16xf32> to vector<16x16xf32>
    %31 = vector.shape_cast %28 : vector<16x16xf32> to vector<1x1x16x16xf32>
    tpu.vector_store %arg8[%c0_18, %c0_19, %c0_20, %c0_21], %31 {strides = array<i32>} : memref<1x1x16x16xf32, #tpu.memory_space<vmem>>, vector<1x1x16x16xf32>,
    %32 = arith.truncf %28 : vector<16x16xf32> to vector<16x16xbf16>
    %33 = arith.truncf %15 : vector<16x32xf32> to vector<16x32xbf16>
    %cst_22 = arith.constant dense<0.000000e+00> : vector<16x32xf32>
    %34 = tpu.matmul %32, %33, %cst_22 {dimension_numbers = #tpu.dot_dimension_numbers<[1], [0], [0], [1], [0, 0, 1, 1], [], []>} : vector<16x16xbf16>, vector<16x32xbf16>, vector<16x32xf32> -> vector<16x32xf32>
    %35 = arith.truncf %34 : vector<16x32xf32> to vector<16x32xbf16>
    %c0_23 = arith.constant 0 : index
    %c0_24 = arith.constant 0 : index
    %c0_25 = arith.constant 0 : index
    %36 = vector.load %arg4[%c0_23, %c0_24, %c0_25] : memref<1x32x32xbf16, #tpu.memory_space<vmem>>, vector<1x32x32xbf16>
    %37 = vector.shape_cast %36 : vector<1x32x32xbf16> to vector<32x32xbf16>
    %cst_26 = arith.constant dense<0.000000e+00> : vector<16x32xf32>
    %38 = tpu.matmul %35, %37, %cst_26 {dimension_numbers = #tpu.dot_dimension_numbers<[1], [0], [0], [1], [0, 0, 1, 1], [], []>} : vector<16x32xbf16>, vector<32x32xbf16>, vector<16x32xf32> -> vector<16x32xf32>
    %39 = arith.addf %38, %3 : vector<16x32xf32>
    %c0_27 = arith.constant 0 : index
    %c0_28 = arith.constant 0 : index
    %40 = vector.load %arg9[%c0_27, %c0_28] : memref<16x32xf32, #tpu.memory_space<vmem>>, vector<16x32xf32>
    tpu.vector_store %arg9[%c0_27, %c0_28], %39 {strides = array<i32>} : memref<16x32xf32, #tpu.memory_space<vmem>>, vector<16x32xf32>,
    %c1_i32 = arith.constant 1 : i32
    %41 = arith.cmpi eq, %arg1, %c1_i32 : i32
    %42 = arith.extui %41 : i1 to i32
    %c0_i32_29 = arith.constant 0 : i32
    %43 = arith.cmpi ne, %42, %c0_i32_29 : i32
    scf.if %43 {
      %c0_30 = arith.constant 0 : index
      %c0_31 = arith.constant 0 : index
      %44 = vector.load %arg5[%c0_30, %c0_31] : memref<1x32xf32, #tpu.memory_space<vmem>>, vector<1x32xf32>
      %c0_32 = arith.constant 0 : index
      %c0_33 = arith.constant 0 : index
      %45 = vector.load %arg6[%c0_32, %c0_33] : memref<1x32xf32, #tpu.memory_space<vmem>>, vector<1x32xf32>
      %cst_34 = arith.constant dense<0.000000e+00> : vector<16xf32>
      %46 = vector.multi_reduction <add>, %39, %cst_34 [1] : vector<16x32xf32> to vector<16xf32>
      %47 = vector.shape_cast %46 : vector<16xf32> to vector<16x1xf32>
      %cst_35 = arith.constant 3.200000e+01 : f32
      %48 = vector.broadcast %cst_35 : f32 to vector<16x1xf32>
      %49 = arith.divf %47, %48 : vector<16x1xf32>
      %50 = vector.broadcast %49 : vector<16x1xf32> to vector<16x32xf32>
      %51 = arith.subf %39, %50 : vector<16x32xf32>
      %52 = arith.mulf %51, %51 : vector<16x32xf32>
      %cst_36 = arith.constant dense<0.000000e+00> : vector<16xf32>
      %53 = vector.multi_reduction <add>, %52, %cst_36 [1] : vector<16x32xf32> to vector<16xf32>
      %54 = vector.shape_cast %53 : vector<16xf32> to vector<16x1xf32>
      %cst_37 = arith.constant 3.200000e+01 : f32
      %55 = vector.broadcast %cst_37 : f32 to vector<16x1xf32>
      %56 = arith.divf %54, %55 : vector<16x1xf32>
      %cst_38 = arith.constant 9.99999974E-6 : f32
      %57 = vector.broadcast %cst_38 : f32 to vector<16x1xf32>
      %58 = arith.addf %56, %57 : vector<16x1xf32>
      %59 = math.rsqrt %58 : vector<16x1xf32>
      %60 = vector.broadcast %59 : vector<16x1xf32> to vector<16x32xf32>
      %61 = arith.mulf %51, %60 : vector<16x32xf32>
      %62 = vector.broadcast %44 : vector<1x32xf32> to vector<16x32xf32>
      %63 = arith.mulf %61, %62 : vector<16x32xf32>
      %64 = vector.broadcast %45 : vector<1x32xf32> to vector<16x32xf32>
      %65 = arith.addf %63, %64 : vector<16x32xf32>
      %c0_39 = arith.constant 0 : index
      %c0_40 = arith.constant 0 : index
      %c0_41 = arith.constant 0 : index
      %66 = vector.load %arg7[%c0_39, %c0_40, %c0_41] : memref<1x16x32xf32, #tpu.memory_space<vmem>>, vector<1x16x32xf32>
      %67 = vector.shape_cast %66 : vector<1x16x32xf32> to vector<16x32xf32>
      %68 = vector.shape_cast %65 : vector<16x32xf32> to vector<1x16x32xf32>
      tpu.vector_store %arg7[%c0_39, %c0_40, %c0_41], %68 {strides = array<i32>} : memref<1x16x32xf32, #tpu.memory_space<vmem>>, vector<1x16x32xf32>,
    } else {
    }
    return
  }
  func.func @transform_0(%arg0: i32, %arg1: i32) -> (i32, i32, i32) {
    %c0_i32 = arith.constant 0 : i32
    %c0_i32_0 = arith.constant 0 : i32
    %c0_i32_1 = arith.constant 0 : i32
    return %arg0, %c0_i32, %c0_i32_0 : i32, i32, i32
  }
  func.func @transform_1(%arg0: i32, %arg1: i32) -> (i32, i32, i32, i32) {
    %c0_i32 = arith.constant 0 : i32
    %c0_i32_0 = arith.constant 0 : i32
    %c0_i32_1 = arith.constant 0 : i32
    %c0_i32_2 = arith.constant 0 : i32
    return %arg1, %c0_i32, %c0_i32_0, %c0_i32_1 : i32, i32, i32, i32
  }
  func.func @transform_2(%arg0: i32, %arg1: i32) -> (i32, i32, i32) {
    %c0_i32 = arith.constant 0 : i32
    %c0_i32_0 = arith.constant 0 : i32
    %c0_i32_1 = arith.constant 0 : i32
    return %arg1, %c0_i32, %c0_i32_0 : i32, i32, i32
  }
  func.func @transform_3(%arg0: i32, %arg1: i32) -> (i32, i32) {
    %c0_i32 = arith.constant 0 : i32
    %c0_i32_0 = arith.constant 0 : i32
    %c0_i32_1 = arith.constant 0 : i32
    return %c0_i32, %c0_i32_0 : i32, i32
  }
  func.func @transform_4(%arg0: i32, %arg1: i32) -> (i32, i32) {
    %c0_i32 = arith.constant 0 : i32
    %c0_i32_0 = arith.constant 0 : i32
    %c0_i32_1 = arith.constant 0 : i32
    return %c0_i32, %c0_i32_0 : i32, i32
  }
  func.func @transform_5(%arg0: i32, %arg1: i32) -> (i32, i32, i32) {
    %c0_i32 = arith.constant 0 : i32
    %c0_i32_0 = arith.constant 0 : i32
    %c0_i32_1 = arith.constant 0 : i32
    return %arg0, %c0_i32, %c0_i32_0 : i32, i32, i32
  }
  func.func @transform_6(%arg0: i32, %arg1: i32) -> (i32, i32, i32, i32) {
    %c0_i32 = arith.constant 0 : i32
    %c0_i32_0 = arith.constant 0 : i32
    %c0_i32_1 = arith.constant 0 : i32
    return %arg1, %arg0, %c0_i32, %c0_i32_0 : i32, i32, i32, i32
  }
}

module attributes {stable_mosaic.version = 11 : i64} {
  func.func @_bma_stack_kernel(%arg0: i32, %arg1: i32, %arg2: memref<1x16x32xf32, #tpu.memory_space<vmem>>, %arg3: memref<1x3x32x32xbf16, #tpu.memory_space<vmem>>, %arg4: memref<1x3x32x32xbf16, #tpu.memory_space<vmem>>, %arg5: memref<1x32xf32, #tpu.memory_space<vmem>>, %arg6: memref<1x32xf32, #tpu.memory_space<vmem>>, %arg7: memref<1x16x32xf32, #tpu.memory_space<vmem>>, %arg8: memref<1x1x8x8xf32, #tpu.memory_space<vmem>>, %arg9: memref<16x32xf32, #tpu.memory_space<vmem>>) attributes {dimension_semantics = [#tpu.dimension_semantics<parallel>, #tpu.dimension_semantics<arbitrary>], iteration_bounds = array<i64: 2, 2>, scalar_prefetch = 0 : i64, scratch_operands = 1 : i64, tpu.core_type = #tpu.core_type<tc>, window_params = [{transform_indices = @transform_0, window_bounds = array<i64: 1, 16, 32>}, {transform_indices = @transform_1, window_bounds = array<i64: 1, 3, 32, 32>}, {transform_indices = @transform_2, window_bounds = array<i64: 1, 3, 32, 32>}, {pipeline_mode = #tpu.pipeline_mode<synchronous>, transform_indices = @transform_3, window_bounds = array<i64: 1, 32>}, {pipeline_mode = #tpu.pipeline_mode<synchronous>, transform_indices = @transform_4, window_bounds = array<i64: 1, 32>}, {transform_indices = @transform_5, window_bounds = array<i64: 1, 16, 32>}, {transform_indices = @transform_6, window_bounds = array<i64: 1, 1, 8, 8>}]} {
    %c0_i32 = arith.constant 0 : i32
    %0 = arith.cmpi eq, %arg1, %c0_i32 : i32
    %1 = arith.extui %0 : i1 to i32
    %c0_i32_0 = arith.constant 0 : i32
    %2 = arith.cmpi ne, %1, %c0_i32_0 : i32
    scf.if %2 {
      %c0_49 = arith.constant 0 : index
      %c0_50 = arith.constant 0 : index
      %c0_51 = arith.constant 0 : index
      %69 = vector.load %arg2[%c0_49, %c0_50, %c0_51] : memref<1x16x32xf32, #tpu.memory_space<vmem>>, vector<1x16x32xf32>
      %70 = vector.shape_cast %69 : vector<1x16x32xf32> to vector<16x32xf32>
      %c0_52 = arith.constant 0 : index
      %c0_53 = arith.constant 0 : index
      %71 = vector.load %arg9[%c0_52, %c0_53] : memref<16x32xf32, #tpu.memory_space<vmem>>, vector<16x32xf32>
      tpu.vector_store %arg9[%c0_52, %c0_53], %70 {strides = array<i32>} : memref<16x32xf32, #tpu.memory_space<vmem>>, vector<16x32xf32>,
    } else {
    }
    %c0 = arith.constant 0 : index
    %c0_1 = arith.constant 0 : index
    %3 = vector.load %arg9[%c0, %c0_1] : memref<16x32xf32, #tpu.memory_space<vmem>>, vector<8x32xf32>
    %c8 = arith.constant 8 : index
    %c0_2 = arith.constant 0 : index
    %4 = vector.load %arg9[%c8, %c0_2] : memref<16x32xf32, #tpu.memory_space<vmem>>, vector<8x32xf32>
    %5 = arith.truncf %3 : vector<8x32xf32> to vector<8x32xbf16>
    %6 = arith.truncf %4 : vector<8x32xf32> to vector<8x32xbf16>
    %c0_3 = arith.constant 0 : index
    %c0_4 = arith.constant 0 : index
    %c0_5 = arith.constant 0 : index
    %c0_6 = arith.constant 0 : index
    %7 = vector.load %arg3[%c0_3, %c0_4, %c0_5, %c0_6] : memref<1x3x32x32xbf16, #tpu.memory_space<vmem>>, vector<1x1x32x32xbf16>
    %8 = vector.shape_cast %7 : vector<1x1x32x32xbf16> to vector<32x32xbf16>
    %c0_7 = arith.constant 0 : index
    %c1 = arith.constant 1 : index
    %c0_8 = arith.constant 0 : index
    %c0_9 = arith.constant 0 : index
    %9 = vector.load %arg3[%c0_7, %c1, %c0_8, %c0_9] : memref<1x3x32x32xbf16, #tpu.memory_space<vmem>>, vector<1x1x32x32xbf16>
    %10 = vector.shape_cast %9 : vector<1x1x32x32xbf16> to vector<32x32xbf16>
    %c0_10 = arith.constant 0 : index
    %c2 = arith.constant 2 : index
    %c0_11 = arith.constant 0 : index
    %c0_12 = arith.constant 0 : index
    %11 = vector.load %arg3[%c0_10, %c2, %c0_11, %c0_12] : memref<1x3x32x32xbf16, #tpu.memory_space<vmem>>, vector<1x1x32x32xbf16>
    %12 = vector.shape_cast %11 : vector<1x1x32x32xbf16> to vector<32x32xbf16>
    %c0_13 = arith.constant 0 : index
    %c0_14 = arith.constant 0 : index
    %c0_15 = arith.constant 0 : index
    %c0_16 = arith.constant 0 : index
    %13 = vector.load %arg4[%c0_13, %c0_14, %c0_15, %c0_16] : memref<1x3x32x32xbf16, #tpu.memory_space<vmem>>, vector<1x1x32x32xbf16>
    %14 = vector.shape_cast %13 : vector<1x1x32x32xbf16> to vector<32x32xbf16>
    %c0_17 = arith.constant 0 : index
    %c1_18 = arith.constant 1 : index
    %c0_19 = arith.constant 0 : index
    %c0_20 = arith.constant 0 : index
    %15 = vector.load %arg4[%c0_17, %c1_18, %c0_19, %c0_20] : memref<1x3x32x32xbf16, #tpu.memory_space<vmem>>, vector<1x1x32x32xbf16>
    %16 = vector.shape_cast %15 : vector<1x1x32x32xbf16> to vector<32x32xbf16>
    %c0_21 = arith.constant 0 : index
    %c2_22 = arith.constant 2 : index
    %c0_23 = arith.constant 0 : index
    %c0_24 = arith.constant 0 : index
    %17 = vector.load %arg4[%c0_21, %c2_22, %c0_23, %c0_24] : memref<1x3x32x32xbf16, #tpu.memory_space<vmem>>, vector<1x1x32x32xbf16>
    %18 = vector.shape_cast %17 : vector<1x1x32x32xbf16> to vector<32x32xbf16>
    %cst = arith.constant dense<0.000000e+00> : vector<8x32xf32>
    %19 = tpu.matmul %5, %8, %cst {dimension_numbers = #tpu.dot_dimension_numbers<[1], [0], [0], [1], [0, 0, 1, 1], [], []>} : vector<8x32xbf16>, vector<32x32xbf16>, vector<8x32xf32> -> vector<8x32xf32>
    %cst_25 = arith.constant 0.176776692 : f32
    %20 = vector.broadcast %cst_25 : f32 to vector<8x32xf32>
    %21 = arith.mulf %19, %20 : vector<8x32xf32>
    %cst_26 = arith.constant dense<0.000000e+00> : vector<8x32xf32>
    %22 = tpu.matmul %5, %10, %cst_26 {dimension_numbers = #tpu.dot_dimension_numbers<[1], [0], [0], [1], [0, 0, 1, 1], [], []>} : vector<8x32xbf16>, vector<32x32xbf16>, vector<8x32xf32> -> vector<8x32xf32>
    %cst_27 = arith.constant dense<0.000000e+00> : vector<8x32xf32>
    %23 = tpu.matmul %5, %12, %cst_27 {dimension_numbers = #tpu.dot_dimension_numbers<[1], [0], [0], [1], [0, 0, 1, 1], [], []>} : vector<8x32xbf16>, vector<32x32xbf16>, vector<8x32xf32> -> vector<8x32xf32>
    %cst_28 = arith.constant dense<0.000000e+00> : vector<8x32xf32>
    %24 = tpu.matmul %6, %14, %cst_28 {dimension_numbers = #tpu.dot_dimension_numbers<[1], [0], [0], [1], [0, 0, 1, 1], [], []>} : vector<8x32xbf16>, vector<32x32xbf16>, vector<8x32xf32> -> vector<8x32xf32>
    %cst_29 = arith.constant 0.176776692 : f32
    %25 = vector.broadcast %cst_29 : f32 to vector<8x32xf32>
    %26 = arith.mulf %24, %25 : vector<8x32xf32>
    %cst_30 = arith.constant dense<0.000000e+00> : vector<8x32xf32>
    %27 = tpu.matmul %6, %16, %cst_30 {dimension_numbers = #tpu.dot_dimension_numbers<[1], [0], [0], [1], [0, 0, 1, 1], [], []>} : vector<8x32xbf16>, vector<32x32xbf16>, vector<8x32xf32> -> vector<8x32xf32>
    %cst_31 = arith.constant dense<0.000000e+00> : vector<8x32xf32>
    %28 = tpu.matmul %6, %18, %cst_31 {dimension_numbers = #tpu.dot_dimension_numbers<[1], [0], [0], [1], [0, 0, 1, 1], [], []>} : vector<8x32xbf16>, vector<32x32xbf16>, vector<8x32xf32> -> vector<8x32xf32>
    %29 = arith.truncf %21 : vector<8x32xf32> to vector<8x32xbf16>
    %30 = arith.truncf %27 : vector<8x32xf32> to vector<8x32xbf16>
    %cst_32 = arith.constant dense<0.000000e+00> : vector<8x8xf32>
    %31 = tpu.matmul %29, %30, %cst_32 {dimension_numbers = #tpu.dot_dimension_numbers<[1], [1], [0], [0], [0, 0, 1, 0], [], []>} : vector<8x32xbf16>, vector<8x32xbf16>, vector<8x8xf32> -> vector<8x8xf32>
    %cst_33 = arith.constant dense<0xFF800000> : vector<8xf32>
    %32 = vector.multi_reduction <maximumf>, %31, %cst_33 [1] : vector<8x8xf32> to vector<8xf32>
    %33 = vector.shape_cast %32 : vector<8xf32> to vector<8x1xf32>
    %34 = vector.broadcast %33 : vector<8x1xf32> to vector<8x8xf32>
    %35 = arith.subf %31, %34 : vector<8x8xf32>
    %36 = math.exp %35 : vector<8x8xf32>
    %cst_34 = arith.constant dense<0.000000e+00> : vector<8xf32>
    %37 = vector.multi_reduction <add>, %36, %cst_34 [1] : vector<8x8xf32> to vector<8xf32>
    %38 = vector.shape_cast %37 : vector<8xf32> to vector<8x1xf32>
    %39 = tpu.reciprocal %38 {approx = true} : vector<8x1xf32> -> vector<8x1xf32>
    %40 = vector.broadcast %39 : vector<8x1xf32> to vector<8x8xf32>
    %41 = arith.mulf %36, %40 : vector<8x8xf32>
    %c0_35 = arith.constant 0 : index
    %c0_36 = arith.constant 0 : index
    %c0_37 = arith.constant 0 : index
    %c0_38 = arith.constant 0 : index
    %42 = vector.load %arg8[%c0_35, %c0_36, %c0_37, %c0_38] : memref<1x1x8x8xf32, #tpu.memory_space<vmem>>, vector<1x1x8x8xf32>
    %43 = vector.shape_cast %42 : vector<1x1x8x8xf32> to vector<8x8xf32>
    %44 = vector.shape_cast %41 : vector<8x8xf32> to vector<1x1x8x8xf32>
    tpu.vector_store %arg8[%c0_35, %c0_36, %c0_37, %c0_38], %44 {strides = array<i32>} : memref<1x1x8x8xf32, #tpu.memory_space<vmem>>, vector<1x1x8x8xf32>,
    %45 = arith.truncf %41 : vector<8x8xf32> to vector<8x8xbf16>
    %46 = arith.truncf %28 : vector<8x32xf32> to vector<8x32xbf16>
    %cst_39 = arith.constant dense<0.000000e+00> : vector<8x32xf32>
    %47 = tpu.matmul %45, %46, %cst_39 {dimension_numbers = #tpu.dot_dimension_numbers<[1], [0], [0], [1], [0, 0, 1, 1], [], []>} : vector<8x8xbf16>, vector<8x32xbf16>, vector<8x32xf32> -> vector<8x32xf32>
    %48 = arith.truncf %26 : vector<8x32xf32> to vector<8x32xbf16>
    %49 = arith.truncf %22 : vector<8x32xf32> to vector<8x32xbf16>
    %cst_40 = arith.constant dense<0.000000e+00> : vector<8x8xf32>
    %50 = tpu.matmul %48, %49, %cst_40 {dimension_numbers = #tpu.dot_dimension_numbers<[1], [1], [0], [0], [0, 0, 1, 0], [], []>} : vector<8x32xbf16>, vector<8x32xbf16>, vector<8x8xf32> -> vector<8x8xf32>
    %cst_41 = arith.constant dense<0xFF800000> : vector<8xf32>
    %51 = vector.multi_reduction <maximumf>, %50, %cst_41 [1] : vector<8x8xf32> to vector<8xf32>
    %52 = vector.shape_cast %51 : vector<8xf32> to vector<8x1xf32>
    %53 = vector.broadcast %52 : vector<8x1xf32> to vector<8x8xf32>
    %54 = arith.subf %50, %53 : vector<8x8xf32>
    %55 = math.exp %54 : vector<8x8xf32>
    %cst_42 = arith.constant dense<0.000000e+00> : vector<8xf32>
    %56 = vector.multi_reduction <add>, %55, %cst_42 [1] : vector<8x8xf32> to vector<8xf32>
    %57 = vector.shape_cast %56 : vector<8xf32> to vector<8x1xf32>
    %58 = tpu.reciprocal %57 {approx = true} : vector<8x1xf32> -> vector<8x1xf32>
    %59 = vector.broadcast %58 : vector<8x1xf32> to vector<8x8xf32>
    %60 = arith.mulf %55, %59 : vector<8x8xf32>
    %61 = arith.truncf %60 : vector<8x8xf32> to vector<8x8xbf16>
    %62 = arith.truncf %23 : vector<8x32xf32> to vector<8x32xbf16>
    %cst_43 = arith.constant dense<0.000000e+00> : vector<8x32xf32>
    %63 = tpu.matmul %61, %62, %cst_43 {dimension_numbers = #tpu.dot_dimension_numbers<[1], [0], [0], [1], [0, 0, 1, 1], [], []>} : vector<8x8xbf16>, vector<8x32xbf16>, vector<8x32xf32> -> vector<8x32xf32>
    %c0_44 = arith.constant 0 : index
    %c0_45 = arith.constant 0 : index
    %64 = vector.load %arg9[%c0_44, %c0_45] : memref<16x32xf32, #tpu.memory_space<vmem>>, vector<8x32xf32>
    tpu.vector_store %arg9[%c0_44, %c0_45], %47 {strides = array<i32>} : memref<16x32xf32, #tpu.memory_space<vmem>>, vector<8x32xf32>,
    %c8_46 = arith.constant 8 : index
    %c0_47 = arith.constant 0 : index
    %65 = vector.load %arg9[%c8_46, %c0_47] : memref<16x32xf32, #tpu.memory_space<vmem>>, vector<8x32xf32>
    tpu.vector_store %arg9[%c8_46, %c0_47], %63 {strides = array<i32>} : memref<16x32xf32, #tpu.memory_space<vmem>>, vector<8x32xf32>,
    %c1_i32 = arith.constant 1 : i32
    %66 = arith.cmpi eq, %arg1, %c1_i32 : i32
    %67 = arith.extui %66 : i1 to i32
    %c0_i32_48 = arith.constant 0 : i32
    %68 = arith.cmpi ne, %67, %c0_i32_48 : i32
    scf.if %68 {
      %c0_49 = arith.constant 0 : index
      %c0_50 = arith.constant 0 : index
      %69 = vector.load %arg9[%c0_49, %c0_50] : memref<16x32xf32, #tpu.memory_space<vmem>>, vector<16x32xf32>
      %c0_51 = arith.constant 0 : index
      %c0_52 = arith.constant 0 : index
      %70 = vector.load %arg5[%c0_51, %c0_52] : memref<1x32xf32, #tpu.memory_space<vmem>>, vector<1x32xf32>
      %c0_53 = arith.constant 0 : index
      %c0_54 = arith.constant 0 : index
      %71 = vector.load %arg6[%c0_53, %c0_54] : memref<1x32xf32, #tpu.memory_space<vmem>>, vector<1x32xf32>
      %cst_55 = arith.constant dense<0.000000e+00> : vector<16xf32>
      %72 = vector.multi_reduction <add>, %69, %cst_55 [1] : vector<16x32xf32> to vector<16xf32>
      %73 = vector.shape_cast %72 : vector<16xf32> to vector<16x1xf32>
      %cst_56 = arith.constant 3.200000e+01 : f32
      %74 = vector.broadcast %cst_56 : f32 to vector<16x1xf32>
      %75 = arith.divf %73, %74 : vector<16x1xf32>
      %76 = vector.broadcast %75 : vector<16x1xf32> to vector<16x32xf32>
      %77 = arith.subf %69, %76 : vector<16x32xf32>
      %78 = arith.mulf %77, %77 : vector<16x32xf32>
      %cst_57 = arith.constant dense<0.000000e+00> : vector<16xf32>
      %79 = vector.multi_reduction <add>, %78, %cst_57 [1] : vector<16x32xf32> to vector<16xf32>
      %80 = vector.shape_cast %79 : vector<16xf32> to vector<16x1xf32>
      %cst_58 = arith.constant 3.200000e+01 : f32
      %81 = vector.broadcast %cst_58 : f32 to vector<16x1xf32>
      %82 = arith.divf %80, %81 : vector<16x1xf32>
      %cst_59 = arith.constant 9.99999974E-6 : f32
      %83 = vector.broadcast %cst_59 : f32 to vector<16x1xf32>
      %84 = arith.addf %82, %83 : vector<16x1xf32>
      %85 = math.rsqrt %84 : vector<16x1xf32>
      %86 = vector.broadcast %85 : vector<16x1xf32> to vector<16x32xf32>
      %87 = arith.mulf %77, %86 : vector<16x32xf32>
      %88 = vector.broadcast %70 : vector<1x32xf32> to vector<16x32xf32>
      %89 = arith.mulf %87, %88 : vector<16x32xf32>
      %90 = vector.broadcast %71 : vector<1x32xf32> to vector<16x32xf32>
      %91 = arith.addf %89, %90 : vector<16x32xf32>
      %c0_60 = arith.constant 0 : index
      %c0_61 = arith.constant 0 : index
      %c0_62 = arith.constant 0 : index
      %92 = vector.load %arg7[%c0_60, %c0_61, %c0_62] : memref<1x16x32xf32, #tpu.memory_space<vmem>>, vector<1x16x32xf32>
      %93 = vector.shape_cast %92 : vector<1x16x32xf32> to vector<16x32xf32>
      %94 = vector.shape_cast %91 : vector<16x32xf32> to vector<1x16x32xf32>
      tpu.vector_store %arg7[%c0_60, %c0_61, %c0_62], %94 {strides = array<i32>} : memref<1x16x32xf32, #tpu.memory_space<vmem>>, vector<1x16x32xf32>,
    } else {
    }
    return
  }
  func.func @transform_0(%arg0: i32, %arg1: i32) -> (i32, i32, i32) {
    %c0_i32 = arith.constant 0 : i32
    %c0_i32_0 = arith.constant 0 : i32
    %c0_i32_1 = arith.constant 0 : i32
    return %arg0, %c0_i32, %c0_i32_0 : i32, i32, i32
  }
  func.func @transform_1(%arg0: i32, %arg1: i32) -> (i32, i32, i32, i32) {
    %c0_i32 = arith.constant 0 : i32
    %c0_i32_0 = arith.constant 0 : i32
    %c0_i32_1 = arith.constant 0 : i32
    %c0_i32_2 = arith.constant 0 : i32
    return %arg1, %c0_i32, %c0_i32_0, %c0_i32_1 : i32, i32, i32, i32
  }
  func.func @transform_2(%arg0: i32, %arg1: i32) -> (i32, i32, i32, i32) {
    %c0_i32 = arith.constant 0 : i32
    %c0_i32_0 = arith.constant 0 : i32
    %c0_i32_1 = arith.constant 0 : i32
    %c0_i32_2 = arith.constant 0 : i32
    return %arg1, %c0_i32, %c0_i32_0, %c0_i32_1 : i32, i32, i32, i32
  }
  func.func @transform_3(%arg0: i32, %arg1: i32) -> (i32, i32) {
    %c0_i32 = arith.constant 0 : i32
    %c0_i32_0 = arith.constant 0 : i32
    %c0_i32_1 = arith.constant 0 : i32
    return %c0_i32, %c0_i32_0 : i32, i32
  }
  func.func @transform_4(%arg0: i32, %arg1: i32) -> (i32, i32) {
    %c0_i32 = arith.constant 0 : i32
    %c0_i32_0 = arith.constant 0 : i32
    %c0_i32_1 = arith.constant 0 : i32
    return %c0_i32, %c0_i32_0 : i32, i32
  }
  func.func @transform_5(%arg0: i32, %arg1: i32) -> (i32, i32, i32) {
    %c0_i32 = arith.constant 0 : i32
    %c0_i32_0 = arith.constant 0 : i32
    %c0_i32_1 = arith.constant 0 : i32
    return %arg0, %c0_i32, %c0_i32_0 : i32, i32, i32
  }
  func.func @transform_6(%arg0: i32, %arg1: i32) -> (i32, i32, i32, i32) {
    %c0_i32 = arith.constant 0 : i32
    %c0_i32_0 = arith.constant 0 : i32
    %c0_i32_1 = arith.constant 0 : i32
    return %arg1, %arg0, %c0_i32, %c0_i32_0 : i32, i32, i32, i32
  }
}

</mosaic_0001>

<bundles_post_ra>
// kernel: bm_attention_block_forward.3
= control target key start
LH: loop header
LB: loop body
LE: loop exit
PB: predicated region body
PF: predicated region fallthrough
CT: control target
= control target key end

     0   :  { %12 = vsyncpa [#allocation4], 0  ;;  %s1485_s0 = inlined_call_operand.vmem [shape: f32[2,16,32], index: 0, kind: input, shape index: {}]   ;;  %s1486_s1 = inlined_call_operand.vmem [shape: bf16[2,3,32,32], index: 1, kind: input, shape index: {}]   ;;  %s1487_s2 = inlined_call_operand.vmem [shape: bf16[2,32,32], index: 2, kind: input, shape index: {}]   ;;  %s1488_s3 = inlined_call_operand.vmem [shape: f32[1,32], index: 3, kind: input, shape index: {}]   ;;  %s1489_s4 = inlined_call_operand.vmem [shape: f32[1,32], index: 4, kind: input, shape index: {}]   ;;  %s1490_s5 = inlined_call_operand.hbm [shape: f32[2,16,32], index: 5, kind: output, shape index: {0}]   ;;  %s1491_s6 = inlined_call_operand.vmem [shape: f32[2,2,16,16], index: 6, kind: output, shape index: {1}]  }
   0x1   :  { %14 = vsyncpa [#allocation4 + $0x1], 0  ;;  %s1255_s21 = smov 0   ;;  %s1257_s22 = smov 0  }
   0x2   :  { %s1259_s23 = smov 0   ;;  %s1261_s24 = smov 0  }
   0x3   :  { %s1263_s25 = smov 0   ;;  %s1265_s26 = smov 0  }
   0x4   :  { %s1267_s27 = smov 0   ;;  %s1269_s28 = smov 0  }
   0x5 LB: > { %1501 = sst [smem:[#allocation6_spill]] %s1185_s21  ;;  %s915_s29 = sadd.s32 4294967295, %s1213_s28   ;;  %s1213_s28 = sphi %s1269_s28, %s20_s28   ;;  %s1209_s27 = sphi %s1267_s27, %s1521_s27   ;;  %s1205_s26 = sphi %s1265_s26, %s1520_s26   ;;  %s1201_s25 = sphi %s1263_s25, %s1519_s25   ;;  %s1197_s24 = sphi %s1261_s24, %s1518_s24   ;;  %s1193_s23 = sphi %s1259_s23, %s1517_s23   ;;  %s1189_s22 = sphi %s1257_s22, %s1523_s22   ;;  %s1185_s21 = sphi %s1255_s21, %s1522_s21  }
   0x6   : > { %1502 = sst [smem:[#allocation7_spill]] %s1193_s23  ;;  %s916_s30 = sadd.s32 4294967294, %s1213_s28  }
   0x7   : > { %1503 = sst [smem:[#allocation8_spill]] %s1205_s26  ;;  %s29_s7 = sadd.s32 1, %s1205_s26 }
   0x8   : > { %1504 = sst [smem:[#allocation9_spill]] %s1209_s27  ;;  %p30_p0 = scmp.ge.s32.totalorder %s29_s7, 2 }
   0x9   : > { %1505 = sst [smem:[#allocation10_spill]] %s1213_s28  ;;  %s32_s8 = sadd.s32 1, %s1209_s27 }
   0xa   : > { %p169_p1 = scmp.ne.s32.totalorder %s1193_s23, %s1189_s22  ;;  %p170_p2 = scmp.eq.s32.totalorder %s915_s29, 3 }
   0xb   : > { %s1525_s7 = smov (%p30_p0, %s29_s7), 0  ;;  %s1527_s8 = smov (!%p30_p0, %s32_s8), %s1209_s27 }
   0xc   : > { %1506 = sst [smem:[#allocation11_spill]] %s1525_s7  ;;  %p1304_p3 = por %p170_p2, %p169_p1 }
   0xd   : > { %p175_p4 = scmp.ne.s32.totalorder %s1189_s22, %s1185_s21  ;;  %p34_p5 = scmp.ge.s32.totalorder %s1527_s8, 2 }
   0xe   : > { %p176_p6 = scmp.eq.s32.totalorder %s916_s30, 3  ;;  %p919_p7 = scmp.ge.s32.totalorder %s1213_s28, 1 }
   0xf   : > { %p252_p8 = scmp.lt.s32.totalorder %s1213_s28, 5  ;;  %s1529_s8 = smov (%p34_p5, %s1527_s8), 0 }
  0x10   : > { %1508 = sst [smem:[#allocation12_spill]] %s1529_s8  ;;  %p1314_p9 = por %p176_p6, %p175_p4 }
  0x11   : > { %p253_p10 = pnand %p919_p7, %p252_p8  ;;  %s156_s11 = ssub.s32 %s1209_s27, %s1529_s8 }
  0x12   : > { %s1509_s10 = scalar_select %p1314_p9, 1, 0 }
  0x13   : > { %s159_s12 = sadd.s32 1, %s1193_s23  ;;  %p157_p11 = scmp.eq.s32.totalorder %s156_s11, 0 }
  0x14   : > { %1510 = sst [smem:[#allocation13_spill]] %s1509_s10  ;;  %256 = sbr.rel (%p253_p10) target bundleno = 1580 (0x62c), region = 40 }
  0x15   : > { %s1322_s13 = scalar_select %p157_p11, %s1193_s23, %s159_s12  }
  0x16   : > { %s1496_s14 = sand.u32 (!%p253_p10), 1, %s1189_s22   ;;  %p301_p12 = scmp.lt.s32.totalorder (!%p253_p10), %s1201_s25, 1 }
  0x17   : > { %1511 = sst [smem:[#allocation14_spill]] %s1322_s13  ;;  %s920_s15 = sshll.u32 (!%p253_p10), %s1496_s14, 4 }
  0x18   : > { %p306_p13 = scmp.lt.s32.totalorder (!%p253_p10), %s1197_s24, 1  ;;  %p929_p0 = scmp.ne.s32.totalorder (!%p253_p10), %s1197_s24, 0 }
  0x1b   : > { %s302_s16 = scalar_select %p301_p12, %s1201_s25, 1 }
  0x1c   : > { %s307_s17 = scalar_select %p306_p13, %s1197_s24, 1 }
  0x1d   : > { %s960_s18 = sshll.u32 %s302_s16, 4  ;;  %s926_s19 = sshll.u32 %s302_s16, 1  ;;  %vm332_vm0 = vcmask (!%p929_p0), 261120  }
  0x1e   : > { %s305_s30 = scalar_lea.vmem %s1485_s0, %s960_s18  ;;  %s1023_s11 = smul.u32 48, %s307_s17 }
  0x1f   : > { %s961_s12 = sshll.u32 %s307_s17, 4  ;;  %s927_s8 = sshll.u32 %s307_s17, 2  ;;  %v330_v0 = vld [vmem:[%s305_s30] sm:$0xff] (!%p929_p0)  ;;  %v331_v1 = vld [vmem:[%s305_s30 + $0x8] sm:$0xff] (!%p929_p0) }
  0x20   : > { %s1337_s26 = scalar_lea.vmem %s1486_s1, %s1023_s11  ;;  %s1342_s14 = scalar_lea.vmem %s1487_s2, %s961_s12  ;;  %333 = vst.msk [vmem:[#allocation2] sm:$0xff] (!%p929_p0), %vm332_vm0, %v330_v0  ;;  %334 = vst.msk [vmem:[#allocation2 + $0x8] sm:$0xff] (!%p929_p0), %vm332_vm0, %v331_v1 }
  0x21   : > { %s322_s10 = sadd.s32 %s927_s8, %s926_s19  ;;  %s1349_s18 = scalar_lea.vmem [#allocation3], %s920_s15 }
  0x22   : > { %s928_s21 = sshll.u32 %s322_s10, 3  ;;  %329 = sbr.rel (%p929_p0) target bundleno = 41 (0x29), region = 44 }
  0x23   : > { %s1347_s20 = scalar_lea.vmem %s1491_s6, %s928_s21 }
  0x29 PF: > { %v1099_v2 = vld [vmem:[%s1337_s26 + $0x10] sm:$0xff]   ;;  %v1215_v3 = vmov 0.0   ;;  %v1100_v4 = vld [vmem:[%s1337_s26] sm:$0xff]   ;;  %v1101_v5 = vld [vmem:[%s1337_s26 + $0x18] sm:$0xff]   ;;  %vm1216_vm1 = vmmov 0   ;;  %vm364_vm2 = vcmask 261120  }
  0x2a   : > { %987 = vmatprep.subr.bf16.mxu1 %v1215_v3  ;;  %979 = vmatprep.subr.bf16.mxu0 %v1215_v3  ;;  %v1360_v6 = vld [vmem:[#allocation2] sm:$0xff]  ;;  %v1362_v7 = vld [vmem:[#allocation2 + $0x8] sm:$0xff]  ;;  %vm566_vm3 = vcmask 130048   ;;  %p952_p1 = scmp.ne.s32.totalorder %s1197_s24, 1 }
  0x2b   : > { %988 = vmatpush3.bf16.msra.mxu1 %v1099_v2  ;;  %991 = vmatprep.mubr.msk.bf16.mxu1 %vm1216_vm1, %v1215_v3  ;;  %v1102_v8 = vld [vmem:[%s1337_s26 + $0x8] sm:$0xff]   ;;  %v337_v9 = vpack.c.bf16 %v1362_v7, %v1360_v6  ;;  %v1103_v23 = vld [vmem:[%s1337_s26 + $0x20] sm:$0xff]  }
  0x2c   : > { %989 = vmatprep.subr.bf16.mxu1 %v1215_v3  ;;  %980 = vmatpush3.bf16.msra.mxu0 %v1100_v4  ;;  %v1104_v24 = vld [vmem:[%s1337_s26 + $0x28] sm:$0xff]   ;;  %v1105_v46 = vld [vmem:[%s1342_s14] sm:$0xff]  }
  0x2d   : > { %981 = vmatprep.subr.bf16.mxu0 %v1215_v3  ;;  %983 = vmatprep.mubr.msk.bf16.mxu0 %vm1216_vm1, %v1215_v3  ;;  %v1106_v54 = vld [vmem:[%s1342_s14 + $0x8] sm:$0xff]  }
  0x2f   : > { %990 = vmatpush3.bf16.msra.mxu1 %v1101_v5 }
  0x30   : > { %982 = vmatpush3.bf16.msra.mxu0 %v1102_v8  ;;  %1003 = vmatprep.subr.bf16.mxu1 %v1215_v3 }
  0x31   : > { %995 = vmatprep.subr.bf16.mxu0 %v1215_v3 }
  0x32   : > { %992 = vmatmul.mubr.msk.bf16.vlgmr.msra.gmra.mrb[0].mxu1 %vm364_vm2, %v337_v9 }
  0x33   : > { %984 = vmatmul.mubr.msk.bf16.vlgmr.msra.gmra.mrb[0].mxu0 %vm364_vm2, %v337_v9  ;;  %1005 = vmatprep.mubr.msk.bf16.mxu1 %vm1216_vm1, %v1215_v3 }
  0x34   : > { %999 = vmatprep.mubr.msk.bf16.mxu0 %vm1216_vm1, %v1215_v3  ;;  %996 = vmatpush3.bf16.msra.mxu0 %v1103_v23  ;;  %v954_v23 = vld [vmem:[%s1489_s4] ss:$0 sm:$0xff] (!%p952_p1) }
  0x35   : > { %997 = vmatprep.subr.bf16.mxu0 %v1215_v3 }
  0x38   : > { %998 = vmatpush3.bf16.msra.mxu0 %v1104_v24 }
  0x39   : > { %1009 = vmatprep.subr.bf16.mxu0 %v1215_v3 }
  0x3b   : > { %1000 = vmatmul.mubr.msk.bf16.vlgmr.msra.gmra.mrb[4].mxu0 %vm364_vm2, %v337_v9 }
  0x3c   : > { %1011 = vmatprep.mubr.msk.bf16.mxu0 %vm1216_vm1, %v1215_v3 }
 0x105   : > { %v457_v10 = vpop.f32.mrb[0].mxu1 }
 0x106   : > { %v993_v11 = vpop.f32.mrb[1].mxu1  ;;  %v402_v12 = vpop.f32.mrb[0].mxu0 }
 0x107   : > { %v460_v13 = vpop.f32.mrb[2].mxu1  ;;  %v409_v14 = vmul.f32 0.17677669, %v402_v12  ;;  %v985_v15 = vpop.f32.mrb[1].mxu0 }
 0x108   : > { %v518_v16 = vpack.c.bf16 %v460_v13, %v457_v10  ;;  %v994_v17 = vpop.f32.mrb[3].mxu1  ;;  %v405_v18 = vpop.f32.mrb[2].mxu0 }
 0x109   : > { %v410_v19 = vmul.f32 0.17677669, %v405_v18  ;;  %v986_v20 = vpop.f32.mrb[3].mxu0 }
 0x10a   : > { %v523_v21 = vsel %vm364_vm2, %v518_v16, 0 }
 0x10b   : > { %v517_v22 = vpack.c.bf16 %v410_v19, %v409_v14  ;;  %1004 = vmatpush3.bf16.xpose.msra.mxu1 %v523_v21  ;;  %v953_v21 = vld [vmem:[%s1488_s3] ss:$0 sm:$0xff] (!%p952_p1) }
 0x10c   : > { %1015 = vmatprep.subr.bf16.mxu1 %v1215_v3 }
 0x10e   : > { %v510_v41 = vpop.f32.mrb[4].mxu0 }
 0x10f   : > { %v1001_v42 = vpop.f32.mrb[5].mxu0 }
 0x110   : > { %v513_v43 = vpop.f32.mrb[6].mxu0 }
 0x111   : > { %v1002_v44 = vpop.f32.mrb[7].mxu0  ;;  %v592_v45 = vpack.c.bf16 %v513_v43, %v510_v41 }
 0x112   : > { %1006 = vmatmul.mubr.msk.bf16.vlgmr.msra.gmra.mrb[4].mxu1 %vm364_vm2, %v517_v22 }
 0x113   : > { %1019 = vmatprep.mubr.msk.bf16.mxu1 %vm1216_vm1, %v1215_v3  ;;  %1010 = vmatpush3.bf16.msra.mxu0 %v592_v45 }
 0x114   : > { %1016 = vmatpush3.bf16.msra.mxu1 %v1105_v46 }
 0x115   : > { %1017 = vmatprep.subr.bf16.mxu1 %v1215_v3 }
 0x118   : > { %1018 = vmatpush3.bf16.msra.mxu1 %v1106_v54 }
 0x1e5   : > { %v559_v25 = vpop.f32.mrb[4].mxu1 }
 0x1e6   : > { %v1007_v26 = vpop.f32.mrb[5].mxu1  ;;  %v567_v27 = vsel %vm566_vm3, %v559_v25, -inf }
 0x1e7   : > { %568 = vmax.xlane.f32.xlu0 %v567_v27  ;;  %v562_v28 = vpop.f32.mrb[6].mxu1 }
 0x1e8   : > { %v1008_v29 = vpop.f32.mrb[7].mxu1  ;;  %v570_v30 = vsel %vm566_vm3, %v562_v28, -inf }
 0x1eb   : > { %571 = vmax.xlane.f32.xlu0 %v570_v30 }
 0x274   : > { %v569_v31 = vpop.xlane.xlu0 %568 }
 0x275   : > { %v573_v32 = vsub.f32 %v559_v25, %v569_v31 }
 0x277   : > { %v575_v33 = vmul.f32 1.442695, %v573_v32 }
 0x278   : > { %v572_v34 = vpop.xlane.xlu0 %571 }
 0x279   : > { %1107 = vpow2.f32 %v575_v33  ;;  %v574_v35 = vsub.f32 %v562_v28, %v572_v34 }
 0x27b   : > { %v577_v36 = vmul.f32 1.442695, %v574_v35 }
 0x27d   : > { %1109 = vpow2.f32 %v577_v36 }
 0x283   : > { %v1108_v37 = vpop.eup %1107 }
 0x284   : > { %v579_v38 = vsel %vm566_vm3, %v1108_v37, 0.0 }
 0x285   : > { %580 = vadd.xlane.f32.xlu1 %v579_v38 }
 0x287   : > { %v1110_v39 = vpop.eup %1109 }
 0x288   : > { %v582_v40 = vsel %vm566_vm3, %v1110_v39, 0.0 }
 0x289   : > { %583 = vadd.xlane.f32.xlu1 %v582_v40 }
 0x312   : > { %v581_v47 = vpop.xlane.xlu1 %580 }
 0x313   : > { %1111 = vrcp.f32 %v581_v47 }
 0x316   : > { %v584_v48 = vpop.xlane.xlu1 %583 }
 0x317   : > { %1113 = vrcp.f32 %v584_v48 }
 0x31d   : > { %v1112_v49 = vpop.eup %1111 }
 0x31e   : > { %v587_v50 = vmul.f32 %v1112_v49, %v1108_v37 }
 0x320   : > { %589 = vst.msk [vmem:[%s1347_s20] sm:$0xff] %vm566_vm3, %v587_v50 }
 0x321   : > { %v1114_v51 = vpop.eup %1113 }
 0x322   : > { %v588_v52 = vmul.f32 %v1114_v51, %v1110_v39 }
 0x324   : > { %590 = vst.msk [vmem:[%s1347_s20 + $0x8] sm:$0xff] %vm566_vm3, %v588_v52  ;;  %v591_v53 = vpack.c.bf16 %v588_v52, %v587_v50 }
 0x326   : > { %1012 = vmatmul.mubr.msk.bf16.vlgmr.msra.gmra.mrb[8].mxu0 %vm566_vm3, %v591_v53 }
 0x3f9   : > { %v630_v55 = vpop.f32.mrb[8].mxu0 }
 0x3fa   : > { %v1013_v56 = vpop.f32.mrb[9].mxu0 }
 0x3fb   : > { %v633_v57 = vpop.f32.mrb[10].mxu0 }
 0x3fc   : > { %v637_v58 = vpack.c.bf16 %v633_v57, %v630_v55  ;;  %v1014_v59 = vpop.f32.mrb[11].mxu0 }
 0x3fe   : > { %1020 = vmatmul.mubr.msk.bf16.vlgmr.msra.gmra.mrb[8].mxu1 %vm364_vm2, %v637_v58 }
 0x4d0   : > { %703 = sbr.rel (%p952_p1) target bundleno = 1554 (0x612), region = 48 }
 0x4d1   : > { %v691_v60 = vpop.f32.mrb[8].mxu1 }
 0x4d2   : > { %v692_v61 = vadd.f32 %v691_v60, %v1360_v6  ;;  %v1021_v62 = vpop.f32.mrb[9].mxu1 }
 0x4d3   : > { %v694_v63 = vpop.f32.mrb[10].mxu1 }
 0x4d4   : > { %698 = vst.msk [vmem:[#allocation2] sm:$0xff] %vm364_vm2, %v692_v61  ;;  %v695_v0 = vadd.f32 %v694_v63, %v1362_v7  ;;  %v1022_v1 = vpop.f32.mrb[11].mxu1  ;;  %v706_v2 = vsel (!%p952_p1), %vm364_vm2, %v692_v61, 0.0 }
 0x4d5   : > { %707 = vadd.xlane.f32.xlu0 (!%p952_p1), %v706_v2 }
 0x4d6   : > { %699 = vst.msk [vmem:[#allocation2 + $0x8] sm:$0xff] %vm364_vm2, %v695_v0  ;;  %v709_v3 = vsel (!%p952_p1), %vm364_vm2, %v695_v0, 0.0 }
 0x4d9   : > { %710 = vadd.xlane.f32.xlu0 %v709_v3 }
 0x562   : > { %v708_v4 = vpop.xlane.xlu0 %707 }
 0x563   : > { %v713_v5 = vmul.f32 0.03125, %v708_v4 }
 0x565   : > { %v715_v6 = vsub.f32 %v692_v61, %v713_v5 }
 0x566   : > { %v711_v8 = vpop.xlane.xlu0 %710 }
 0x567   : > { %v714_v9 = vmul.f32 0.03125, %v711_v8  ;;  %v717_v10 = vmul.f32 %v715_v6, %v715_v6 }
 0x569   : > { %v716_v11 = vsub.f32 %v695_v0, %v714_v9  ;;  %v719_v7 = vsel %vm364_vm2, %v717_v10, 0.0 }
 0x56a   : > { %720 = vadd.xlane.f32.xlu1 %v719_v7 }
 0x56b   : > { %v718_v12 = vmul.f32 %v716_v11, %v716_v11 }
 0x56d   : > { %v722_v13 = vsel %vm364_vm2, %v718_v12, 0.0 }
 0x56e   : > { %723 = vadd.xlane.f32.xlu1 %v722_v13 }
 0x5f7   : > { %v721_v14 = vpop.xlane.xlu1 %720 }
 0x5f8   : > { %v725_v15 = vmul.f32 0.03125, %v721_v14 }
 0x5fa   : > { %v727_v16 = vadd.f32 1e-05, %v725_v15 }
 0x5fb   : > { %v724_v17 = vpop.xlane.xlu1 %723 }
 0x5fc   : > { %1115 = vrsqrt.f32 %v727_v16  ;;  %v726_v18 = vmul.f32 0.03125, %v724_v17 }
 0x5fe   : > { %v728_v19 = vadd.f32 1e-05, %v726_v18 }
 0x600   : > { %1117 = vrsqrt.f32 %v728_v19 }
 0x606   : > { %v1116_v20 = vpop.eup %1115 }
 0x607   : > { %v731_v22 = vmul.f32 %v1116_v20, %v715_v6 }
 0x609   : > { %v739_v24 = vmul.f32 %v953_v21, %v731_v22 }
 0x60a   : > { %v1118_v25 = vpop.eup %1117 }
 0x60b   : > { %v747_v26 = vadd.f32 %v954_v23, %v739_v24  ;;  %v732_v27 = vmul.f32 %v1118_v25, %v716_v11 }
 0x60d   : > { %749 = vst.msk [vmem:[%s1349_s18] sm:$0xff] %vm364_vm2, %v747_v26  ;;  %v740_v28 = vmul.f32 %v953_v21, %v732_v27 }
 0x60f   : > { %v748_v29 = vadd.f32 %v954_v23, %v740_v28 }
 0x611   : > { %750 = vst.msk [vmem:[%s1349_s18 + $0x8] sm:$0xff] %vm364_vm2, %v748_v29 }
 0x612 PF: > { %s962_s27 = sshll.u32 %s1201_s25, 8  ;;  %s774_s10 = sshll.u32 %s1349_s18, 4  ;;  %s1429_s10 = int_to_ptr.vmem [resolvable:$true] %s774_s10 }
 0x613   : > { %s1426_s8 = scalar_lea.hbm %s1490_s5, %s962_s27  ;;  %s1512_s13 = sand.u32 1, %s1189_s22  }
 0x614   : > { %s1433_s14 = scalar_lea.sflag [#allocation4], %s1512_s13  ;;  %s1119_s15 = scalar_lea.vmem %s1429_s10, 256 }
 0x615   : > { %p1120_p2 = scmp.ne.s32.totalorder %s1429_s10, %s1119_s15  ;;  %s1217_s25 = smov [#allocation3]  }
 0x616   : > { %s1123_s17 = sshll.u32 %s1217_s25, 4  ;;  %s1124_s17 = int_to_ptr.vmem [resolvable:$false] %s1123_s17 }
 0x617   : > { %p1121_p4 = pnand %p1120_p2, %p1304_p3  ;;  %s1125_s19 = scalar_lea.vmem %s1124_s17, 512 }
 0x618   : > { %p1126_p6 = scmp.lt.s32.totalorder %s1429_s10, %s1124_s17  ;;  %p1127_p7 = scmp.lt.s32.totalorder %s1125_s19, %s1119_s15 }
 0x619   : > { %p1122_p5 = pneg %p1121_p4 }
 0x61a   : > { %p1128_p8 = por %p1127_p7, %p1126_p6 }
 0x61c   : > { %p1129_p10 = pnand %p1128_p8, %p1122_p5 }
 0x61e   : > { %1132 = shalt.err (!%p1129_p10)
}
 0x61f   : > { %s1133_s29 = scalar_lea.hbm %s1426_s8, 256  ;;  %s1137_s12 = scalar_lea.hbm %s1490_s5, 512 }
 0x620   : > { %p1134_p11 = scmp.ne.s32.totalorder %s1426_s8, %s1133_s29  ;;  %p1138_p0 = scmp.lt.u32.totalorder %s1426_s8, %s1490_s5 }
 0x621   : > { %p1139_p1 = scmp.lt.u32.totalorder %s1137_s12, %s1133_s29  ;;  %p1141_p4 = scmp.lt.u32.totalorder %s1133_s29, %s1426_s8 }
 0x622   : > { %p1135_p12 = pnand %p1134_p11, %p1304_p3 }
 0x623   : > { %p1140_p2 = por %p1139_p1, %p1138_p0 }
 0x624   : > { %p1136_p13 = pneg %p1135_p12 }
 0x625   : > { %p1142_p5 = por %p1141_p4, %p1140_p2 }
 0x627   : > { %p1143_p6 = pnand %p1142_p5, %p1136_p13 }
 0x629   : > { %1146 = shalt.err (!%p1143_p6)
}
 0x62a   : > { %s1218_s18 = smov 128   ;;  %s1219_s21 = smov 8  }
 0x62b   : > { %1024 = dma.vmem_to_hbm [thread:$0]  (%p1304_p3), %s1429_s10, 256, %s1426_s8, %s1433_s14, %s1218_s18, %s1218_s18, %s1219_s21  }
 0x62c PF: > { %s1513_s23 = sld [smem:[#allocation10_spill]]  ;;  %s1514_s24 = sld [smem:[#allocation6_spill]] }
 0x632   : > { %p1030_p7 = scmp.ge.s32.totalorder %s1513_s23, 2  ;;  %s792_s27 = sand.u32 1, %s1514_s24  }
 0x633   : > { %s793_s28 = scalar_lea.sflag [#allocation4], %s792_s27 }
 0x634   : > { %p1027_p8 = pnand %p1030_p7, %p1314_p9 }
 0x636   : > { %1180 = dma.done.wait (!%p1027_p8), %s793_s28, 256  }
 0x637   : > { %1182 = vsyncadd (!%p1027_p8), %s793_s28, 4294967040  ;;  %s20_s28 = sadd.s32 1, %s1513_s23   ;;  %s1516_s7 = sld [smem:[#allocation7_spill]] }
 0x638   : > { %p17_p10 = scmp.ge.s32.totalorder %s20_s28, 6   ;;  %s1517_s23 = sld [smem:[#allocation14_spill]] }
 0x639   : > { %s1518_s24 = sld [smem:[#allocation8_spill]]  ;;  %s1519_s25 = sld [smem:[#allocation9_spill]] }
 0x63a   : > { %s1520_s26 = sld [smem:[#allocation11_spill]]  ;;  %s1521_s27 = sld [smem:[#allocation12_spill]] }
 0x63b   : > { %s1522_s21 = smov %s1189_s22  ;;  %19 = sbr.rel (!%p17_p10) target bundleno = 5 (0x5), region = 103 }
 0x63d   : > { %s1523_s22 = smov %s1516_s7 }
 0x642   :  { %810 = vsyncpa [#allocation4], 1 }
 0x643   :  { %812 = vsyncpa [#allocation4 + $0x1], 1 }

// kernel: bm_attention_block_forward.2
= control target key start
LH: loop header
LB: loop body
LE: loop exit
PB: predicated region body
PF: predicated region fallthrough
CT: control target
= control target key end

     0   :  { %s1772_s0 = inlined_call_operand.vmem [shape: f32[2,16,32], index: 0, kind: input, shape index: {}]   ;;  %s1773_s1 = inlined_call_operand.vmem [shape: bf16[2,3,32,32], index: 1, kind: input, shape index: {}]   ;;  %s1774_s2 = inlined_call_operand.hbm [shape: bf16[2,3,32,32], index: 2, kind: input, shape index: {}]   ;;  %s1775_s3 = inlined_call_operand.vmem [shape: f32[1,32], index: 3, kind: input, shape index: {}]   ;;  %s1776_s4 = inlined_call_operand.vmem [shape: f32[1,32], index: 4, kind: input, shape index: {}]   ;;  %s1777_s5 = inlined_call_operand.vmem [shape: f32[2,16,32], index: 5, kind: output, shape index: {0}]   ;;  %s1778_s6 = inlined_call_operand.vmem [shape: f32[2,2,8,8], index: 6, kind: output, shape index: {1}]  }
   0x1   :  { %1782 = sst [smem:[#allocation10_spill]] %s1774_s2 }
   0x2   :  { %12 = vsyncpa [#allocation4], 0 }
   0x3   :  { %14 = vsyncpa [#allocation4 + $0x1], 0  ;;  %s1527_s21 = smov 0   ;;  %s1529_s22 = smov 0  }
   0x4   :  { %s1531_s23 = smov 0   ;;  %s1533_s24 = smov 0  }
   0x5   :  { %s1535_s25 = smov 0   ;;  %s1537_s26 = smov 0  }
   0x6   :  { %s1539_s27 = smov 0   ;;  %s1541_s28 = smov 0  }
   0x7 LB: > { %1783 = sst [smem:[#allocation6_spill]] %s1477_s26  ;;  %s1129_s29 = sadd.s32 4294967295, %s1485_s28   ;;  %s1485_s28 = sphi %s1541_s28, %s20_s28   ;;  %s1481_s27 = sphi %s1539_s27, %s1793_s27   ;;  %s1477_s26 = sphi %s1537_s26, %s1792_s26   ;;  %s1473_s25 = sphi %s1535_s25, %s1791_s25   ;;  %s1469_s24 = sphi %s1533_s24, %s1790_s24   ;;  %s1465_s23 = sphi %s1531_s23, %s1796_s23   ;;  %s1461_s22 = sphi %s1529_s22, %s1795_s22   ;;  %s1457_s21 = sphi %s1527_s21, %s1794_s21  }
   0x8   : > { %1784 = sst [smem:[#allocation7_spill]] %s1481_s27  ;;  %s29_s30 = sadd.s32 1, %s1477_s26 }
   0x9   : > { %p30_p0 = scmp.ge.s32.totalorder %s29_s30, 2  ;;  %s32_s7 = sadd.s32 1, %s1481_s27 }
   0xa   : > { %s91_s8 = sadd.s32 1, %s1465_s23  ;;  %p98_p1 = scmp.ne.s32.totalorder %s1465_s23, %s1461_s22 }
   0xb   : > { %s1798_s30 = smov (%p30_p0, %s29_s30), 0  ;;  %s1800_s7 = smov (!%p30_p0, %s32_s7), %s1481_s27 }
   0xc   : > { %1785 = sst [smem:[#allocation8_spill]] %s1798_s30  ;;  %s88_s9 = ssub.s32 %s1477_s26, %s1798_s30 }
   0xd   : > { %p99_p2 = scmp.eq.s32.totalorder %s1485_s28, 0  ;;  %p34_p3 = scmp.ge.s32.totalorder %s1800_s7, 2 }
   0xe   : > { %p89_p4 = scmp.eq.s32.totalorder %s88_s9, 0  ;;  %p104_p6 = scmp.ne.s32.totalorder %s1461_s22, %s1457_s21 }
   0xf   : > { %p100_p5 = por %p99_p2, %p98_p1  ;;  %s1802_s7 = smov (%p34_p3, %s1800_s7), 0 }
  0x10   : > { %1786 = sst [smem:[#allocation9_spill]] %s1802_s7  ;;  %p105_p7 = scmp.eq.s32.totalorder %s1129_s29, 0 }
  0x11   : > { %s1581_s10 = scalar_select %p89_p4, %s1465_s23, %s91_s8  }
  0x12   : > { %p1296_p8 = scmp.lt.s32.totalorder %s1485_s28, 4  ;;  %s246_s11 = sand.u32 1, %s1465_s23  }
  0x13   : > { %p1585_p9 = por %p105_p7, %p104_p6  ;;  %s1286_s13 = smul.u32 48, %s246_s11 }
  0x14   : > { %p1589_p10 = pnand %p1296_p8, %p100_p5  ;;  %s1287_s15 = smul.u32 768, %s1477_s26 }
  0x15   : > { %s1789_s2 = sld [smem:[#allocation10_spill]]  ;;  %s250_s19 = scalar_lea.vmem [#allocation3], %s1286_s13 }
  0x16   : > { %s257_s20 = sshll.u32 %s250_s19, 4  ;;  %s1601_s21 = scalar_lea.sflag [#allocation4], %s246_s11  ;;  %s1599_s20 = int_to_ptr.vmem [resolvable:$true] %s257_s20 }
  0x17   : > { %p1391_p12 = pneg %p1589_p10 }
  0x1b   : > { %s1597_s18 = scalar_lea.hbm %s1789_s2, %s1287_s15  ;;  %s1394_s15 = scalar_lea.hbm %s1789_s2, 1536 }
  0x1c   : > { %s1389_s29 = scalar_lea.hbm %s1597_s18, 768  ;;  %p1395_p1 = scmp.lt.u32.totalorder %s1597_s18, %s1789_s2 }
  0x1d   : > { %p1390_p11 = scmp.ne.s32.totalorder %s1597_s18, %s1389_s29  ;;  %p1396_p2 = scmp.lt.u32.totalorder %s1394_s15, %s1389_s29 }
  0x1e   : > { %p1398_p4 = scmp.lt.u32.totalorder %s1389_s29, %s1597_s18 }
  0x1f   : > { %p1392_p13 = pnand %p1391_p12, %p1390_p11  ;;  %p1397_p3 = por %p1396_p2, %p1395_p1 }
  0x21   : > { %p1393_p0 = pneg %p1392_p13  ;;  %p1399_p5 = por %p1398_p4, %p1397_p3 }
  0x23   : > { %p1400_p6 = pnand %p1399_p5, %p1393_p0 }
  0x25   : > { %1403 = shalt.err (!%p1400_p6)
}
  0x26   : > { %s1404_s11 = scalar_lea.vmem %s1599_s20, 768  ;;  %s1487_s13 = smov [#allocation3]  }
  0x27   : > { %p1405_p7 = scmp.ne.s32.totalorder %s1599_s20, %s1404_s11  ;;  %s1409_s19 = sshll.u32 %s1487_s13, 4  ;;  %s1410_s19 = int_to_ptr.vmem [resolvable:$false] %s1409_s19 }
  0x28   : > { %s1411_s8 = scalar_lea.vmem %s1410_s19, 1536  ;;  %p1412_p13 = scmp.lt.s32.totalorder %s1599_s20, %s1410_s19 }
  0x29   : > { %p1407_p8 = pnand %p1405_p7, %p1391_p12  ;;  %p1413_p1 = scmp.lt.s32.totalorder %s1411_s8, %s1404_s11 }
  0x2b   : > { %p1408_p11 = pneg %p1407_p8  ;;  %p1414_p2 = por %p1413_p1, %p1412_p13 }
  0x2d   : > { %p1415_p3 = pnand %p1414_p2, %p1408_p11 }
  0x2f   : > { %1418 = shalt.err (!%p1415_p3)
}
  0x30   : > { %s1488_s29 = smov 64   ;;  %s1489_s9 = smov 4  }
  0x31   : > { %1295 = dma.hbm_to_vmem [thread:$0]  (!%p1589_p10), %s1597_s18, 768, %s1599_s20, %s1601_s21, %s1488_s29, %s1488_s29, %s1489_s9  }
  0x32   : > { %p1134_p12 = scmp.ge.s32.totalorder %s1485_s28, 1  ;;  %p265_p0 = scmp.lt.s32.totalorder %s1485_s28, 5 }
  0x34   : > { %p266_p4 = pnand %p1134_p12, %p265_p0 }
  0x35   : > { %s271_s15 = sand.u32 (!%p266_p4), 1, %s1461_s22  }
  0x36   : > { %269 = sbr.rel (%p266_p4) target bundleno = 1390 (0x56e), region = 40  ;;  %s272_s17 = scalar_lea.sflag (!%p266_p4), [#allocation4], %s271_s15 }
  0x37   : > { %s1288_s16 = smul.u32 (!%p266_p4), 48, %s271_s15 }
  0x39   : > { %s1632_s11 = scalar_lea.vmem (!%p266_p4), [#allocation3], %s1288_s16 }
  0x3d   : > { %1452 = dma.done.wait (%p1585_p9), %s272_s17, 768  }
  0x3e   : > { %1454 = vsyncadd (%p1585_p9), %s272_s17, 4294966528  ;;  %p322_p10 = scmp.lt.s32.totalorder %s1473_s25, 1  ;;  %p327_p5 = scmp.lt.s32.totalorder %s1469_s24, 1 }
  0x3f   : > { %p1142_p9 = scmp.ne.s32.totalorder %s1469_s24, 0 }
  0x40   : > { %s1804_s25 = smov (!%p322_p10, %s1473_s25), 1  ;;  %vm352_vm0 = vcmask (!%p1142_p9), 261120  }
  0x41   : > { %s328_s14 = scalar_select %p327_p5, %s1469_s24, 1 }
  0x42   : > { %s1186_s18 = sshll.u32 %s1804_s25, 4  ;;  %349 = sbr.rel (%p1142_p9) target bundleno = 73 (0x49), region = 48 }
  0x43   : > { %s326_s13 = scalar_lea.vmem %s1772_s0, %s1186_s18  ;;  %s1289_s19 = smul.u32 48, %s328_s14 }
  0x44   : > { %s1648_s9 = scalar_lea.vmem %s1777_s5, %s1186_s18  ;;  %s1140_s12 = sshll.u32 %s328_s14, 1  ;;  %v350_v0 = vld [vmem:[%s326_s13] sm:$0xff] (!%p1142_p9)  ;;  %v351_v1 = vld [vmem:[%s326_s13 + $0x8] sm:$0xff] (!%p1142_p9) }
  0x45   : > { %s1653_s17 = scalar_lea.vmem %s1773_s1, %s1289_s19  ;;  %s342_s2 = sadd.s32 %s1140_s12, %s1804_s25  ;;  %353 = vst.msk [vmem:[#allocation2] sm:$0xff] (!%p1142_p9), %vm352_vm0, %v350_v0  ;;  %354 = vst.msk [vmem:[#allocation2 + $0x8] sm:$0xff] (!%p1142_p9), %vm352_vm0, %v351_v1 }
  0x46   : > { %s1141_s7 = sshll.u32 %s342_s2, 3 }
  0x47   : > { %s1658_s26 = scalar_lea.vmem %s1778_s6, %s1141_s7 }
  0x49 PF: > { %v1365_v2 = vld [vmem:[%s1653_s17] sm:$0xff]   ;;  %v1490_v3 = vmov 0.0   ;;  %v1366_v4 = vld [vmem:[%s1653_s17 + $0x8] sm:$0xff]   ;;  %vm1491_vm1 = vmmov 0   ;;  %vm399_vm2 = vcmask 261120   ;;  %v1370_v8 = vld [vmem:[%s1653_s17 + $0x10] sm:$0xff]  }
  0x4a   : > { %1214 = vmatprep.subr.bf16.mxu0 %v1490_v3  ;;  %1222 = vmatprep.subr.bf16.mxu1 %v1490_v3  ;;  %v1367_v7 = vld [vmem:[%s1653_s17 + $0x20] sm:$0xff]   ;;  %v1372_v9 = vld [vmem:[%s1653_s17 + $0x18] sm:$0xff]   ;;  %v1368_v10 = vld [vmem:[%s1653_s17 + $0x28] sm:$0xff]   ;;  %vm756_vm3 = vcmask 64512   ;;  %vm774_vm4 = vcmask 1043456   ;;  %p1181_p6 = scmp.ne.s32.totalorder %s1469_s24, 1 }
  0x4b   : > { %1215 = vmatpush3.bf16.msra.mxu0 %v1365_v2  ;;  %1218 = vmatprep.mubr.msk.bf16.mxu0 %vm1491_vm1, %v1490_v3  ;;  %v1373_v11 = vld [vmem:[%s1632_s11] sm:$0xff]   ;;  %v1369_v12 = vld [vmem:[%s1632_s11 + $0x10] sm:$0xff]   ;;  %v1374_v13 = vld [vmem:[%s1632_s11 + $0x8] sm:$0xff]  }
  0x4c   : > { %v355_v5 = vld [vmem:[#allocation2] sm:$0xff]  ;;  %1216 = vmatprep.subr.bf16.mxu0 %v1490_v3  ;;  %1226 = vmatprep.mubr.msk.bf16.mxu1 %vm1491_vm1, %v1490_v3  ;;  %v1371_v14 = vld [vmem:[%s1632_s11 + $0x18] sm:$0xff]   ;;  %v1376_v46 = vld [vmem:[%s1632_s11 + $0x28] sm:$0xff]  }
  0x4d   : > { %v357_v6 = vpack.c.bf16 %v355_v5, %v355_v5  ;;  %1223 = vmatpush3.bf16.msra.mxu1 %v1370_v8  ;;  %v356_v15 = vld [vmem:[#allocation2 + $0x8] sm:$0xff]  ;;  %v1375_v45 = vld [vmem:[%s1632_s11 + $0x20] sm:$0xff]  }
  0x4e   : > { %1224 = vmatprep.subr.bf16.mxu1 %v1490_v3  ;;  %v358_v16 = vpack.c.bf16 %v356_v15, %v356_v15 }
  0x4f   : > { %1217 = vmatpush3.bf16.msra.mxu0 %v1366_v4 }
  0x50   : > { %1230 = vmatprep.subr.bf16.mxu0 %v1490_v3 }
  0x51   : > { %1225 = vmatpush3.bf16.msra.mxu1 %v1372_v9 }
  0x52   : > { %1219 = vmatmul.mubr.msk.bf16.vlgmr.msra.gmra.mrb[0].mxu0 %vm399_vm2, %v357_v6  ;;  %1238 = vmatprep.subr.bf16.mxu1 %v1490_v3 }
  0x53   : > { %1231 = vmatpush3.bf16.msra.mxu0 %v1367_v7  ;;  %1234 = vmatprep.mubr.msk.bf16.mxu0 %vm1491_vm1, %v1490_v3 }
  0x54   : > { %1232 = vmatprep.subr.bf16.mxu0 %v1490_v3  ;;  %1227 = vmatmul.mubr.msk.bf16.vlgmr.msra.gmra.mrb[0].mxu1 %vm399_vm2, %v357_v6 }
  0x55   : > { %1239 = vmatpush3.bf16.msra.mxu1 %v1373_v11  ;;  %1242 = vmatprep.mubr.msk.bf16.mxu1 %vm1491_vm1, %v1490_v3 }
  0x56   : > { %1240 = vmatprep.subr.bf16.mxu1 %v1490_v3 }
  0x57   : > { %1233 = vmatpush3.bf16.msra.mxu0 %v1368_v10 }
  0x58   : > { %1246 = vmatprep.subr.bf16.mxu0 %v1490_v3 }
  0x59   : > { %1241 = vmatpush3.bf16.msra.mxu1 %v1374_v13 }
  0x5a   : > { %1235 = vmatmul.mubr.msk.bf16.vlgmr.msra.gmra.mrb[4].mxu0 %vm399_vm2, %v357_v6  ;;  %1254 = vmatprep.subr.bf16.mxu1 %v1490_v3 }
  0x5b   : > { %1247 = vmatpush3.bf16.msra.mxu0 %v1369_v12  ;;  %1250 = vmatprep.mubr.msk.bf16.mxu0 %vm1491_vm1, %v1490_v3 }
  0x5c   : > { %1248 = vmatprep.subr.bf16.mxu0 %v1490_v3  ;;  %1243 = vmatmul.mubr.msk.bf16.vlgmr.msra.gmra.mrb[4].mxu1 %vm399_vm2, %v358_v16 }
  0x5d   : > { %1258 = vmatprep.mubr.msk.bf16.mxu1 %vm1491_vm1, %v1490_v3  ;;  %1255 = vmatpush3.bf16.msra.mxu1 %v1375_v45 }
  0x5e   : > { %1256 = vmatprep.subr.bf16.mxu1 %v1490_v3 }
  0x5f   : > { %1249 = vmatpush3.bf16.msra.mxu0 %v1371_v14 }
  0x60   : > { %1262 = vmatprep.subr.bf16.mxu0 %v1490_v3 }
  0x61   : > { %1257 = vmatpush3.bf16.msra.mxu1 %v1376_v46 }
  0x62   : > { %1251 = vmatmul.mubr.msk.bf16.vlgmr.msra.gmra.mrb[8].mxu0 %vm399_vm2, %v358_v16  ;;  %1268 = vmatprep.subr.bf16.mxu1 %v1490_v3 }
  0x63   : > { %1264 = vmatprep.mubr.msk.bf16.mxu0 %vm1491_vm1, %v1490_v3 }
  0x64   : > { %1259 = vmatmul.mubr.msk.bf16.vlgmr.msra.gmra.mrb[8].mxu1 %vm399_vm2, %v358_v16 }
  0x65   : > { %1270 = vmatprep.mubr.msk.bf16.mxu1 %vm1491_vm1, %v1490_v3 }
 0x125   : > { %v437_v17 = vpop.f32.mrb[0].mxu0 }
 0x126   : > { %v1220_v18 = vpop.f32.mrb[1].mxu0  ;;  %v443_v39 = vmul.f32 0.17677669, %v437_v17 }
 0x127   : > { %v440_v19 = vpop.f32.mrb[2].mxu0  ;;  %v490_v21 = vpop.f32.mrb[0].mxu1 }
 0x128   : > { %v1221_v20 = vpop.f32.mrb[3].mxu0  ;;  %v1228_v22 = vpop.f32.mrb[1].mxu1  ;;  %v819_v40 = vpack.c.bf16 %v490_v21, %v490_v21  ;;  %v708_v41 = vpack.c.bf16 %v443_v39, %v443_v39 }
 0x129   : > { %v493_v24 = vpop.f32.mrb[2].mxu1 }
 0x12a   : > { %v1229_v26 = vpop.f32.mrb[3].mxu1  ;;  %v824_v42 = vsel %vm399_vm2, %v819_v40, 0 }
 0x12d   : > { %v1702_v23 = vpop.f32.mrb[4].mxu0 }
 0x12e   : > { %v1236_v25 = vpop.f32.mrb[5].mxu0  ;;  %v878_v13 = vpack.c.bf16 %v1702_v23, %v1702_v23 }
 0x12f   : > { %v545_v27 = vpop.f32.mrb[6].mxu0  ;;  %v597_v29 = vpop.f32.mrb[4].mxu1 }
 0x130   : > { %v1237_v28 = vpop.f32.mrb[7].mxu0  ;;  %v1244_v30 = vpop.f32.mrb[5].mxu1  ;;  %v603_v43 = vmul.f32 0.17677669, %v597_v29  ;;  %v883_v16 = vsel %vm774_vm4, %v878_v13, 0 }
 0x131   : > { %v600_v32 = vpop.f32.mrb[6].mxu1 }
 0x132   : > { %v1245_v35 = vpop.f32.mrb[7].mxu1  ;;  %v818_v44 = vpack.c.bf16 %v603_v43, %v603_v43 }
 0x135   : > { %v650_v31 = vpop.f32.mrb[8].mxu0 }
 0x136   : > { %v709_v33 = vpack.c.bf16 %v650_v31, %v650_v31  ;;  %v1252_v34 = vpop.f32.mrb[9].mxu0 }
 0x137   : > { %v653_v36 = vpop.f32.mrb[10].mxu0  ;;  %v702_v4 = vpop.f32.mrb[8].mxu1 }
 0x138   : > { %v714_v37 = vsel %vm399_vm2, %v709_v33, 0  ;;  %v1253_v38 = vpop.f32.mrb[11].mxu0  ;;  %v1260_v5 = vpop.f32.mrb[9].mxu1  ;;  %v770_v7 = vpack.c.bf16 %v702_v4, %v702_v4 }
 0x139   : > { %1263 = vmatpush3.bf16.xpose.msra.mxu0 %v714_v37  ;;  %v705_v6 = vpop.f32.mrb[10].mxu1 }
 0x13a   : > { %1274 = vmatprep.subr.bf16.mxu0 %v1490_v3  ;;  %v1261_v8 = vpop.f32.mrb[11].mxu1  ;;  %v776_v9 = vsel %vm774_vm4, %v770_v7, 0 }
 0x13b   : > { %1269 = vmatpush3.bf16.msra.mxu1 %v776_v9 }
 0x13c   : > { %1280 = vmatprep.subr.bf16.mxu1 %v1490_v3 }
 0x140   : > { %1265 = vmatmul.mubr.msk.bf16.vlgmr.msra.gmra.mrb[12].mxu0 %vm399_vm2, %v708_v41 }
 0x141   : > { %1275 = vmatpush3.bf16.xpose.msra.mxu0 %v824_v42  ;;  %1276 = vmatprep.mubr.msk.bf16.mxu0 %vm1491_vm1, %v1490_v3 }
 0x148   : > { %1277 = vmatmul.mubr.msk.bf16.vlgmr.msra.gmra.mrb[16].mxu0 %vm399_vm2, %v818_v44 }
 0x213   : > { %v750_v47 = vpop.f32.mrb[12].mxu0 }
 0x214   : > { %v1266_v48 = vpop.f32.mrb[13].mxu0  ;;  %v757_v49 = vsel %vm756_vm3, %v750_v47, -inf }
 0x215   : > { %758 = vmax.xlane.f32.xlu0 %v757_v49  ;;  %v753_v50 = vpop.f32.mrb[14].mxu0  ;;  %v1182_v48 = vld [vmem:[%s1775_s3] ss:$0 sm:$0xff] (!%p1181_p6) }
 0x216   : > { %v1267_v51 = vpop.f32.mrb[15].mxu0  ;;  %v1183_v50 = vld [vmem:[%s1776_s4] ss:$0 sm:$0xff] (!%p1181_p6) }
 0x21b   : > { %v860_v52 = vpop.f32.mrb[16].mxu0 }
 0x21c   : > { %v1278_v53 = vpop.f32.mrb[17].mxu0  ;;  %v866_v54 = vsel %vm756_vm3, %v860_v52, -inf }
 0x21d   : > { %867 = vmax.xlane.f32.xlu0 %v866_v54  ;;  %v863_v55 = vpop.f32.mrb[18].mxu0 }
 0x21e   : > { %v1279_v56 = vpop.f32.mrb[19].mxu0 }
 0x2a2   : > { %v759_v57 = vpop.xlane.xlu0 %758 }
 0x2a3   : > { %v760_v58 = vsub.f32 %v750_v47, %v759_v57 }
 0x2a5   : > { %v761_v59 = vmul.f32 1.442695, %v760_v58 }
 0x2a7   : > { %1377 = vpow2.f32 %v761_v59 }
 0x2aa   : > { %v868_v60 = vpop.xlane.xlu0 %867 }
 0x2ab   : > { %v869_v61 = vsub.f32 %v860_v52, %v868_v60 }
 0x2ad   : > { %v870_v62 = vmul.f32 1.442695, %v869_v61 }
 0x2af   : > { %1379 = vpow2.f32 %v870_v62 }
 0x2b1   : > { %v1378_v63 = vpop.eup %1377 }
 0x2b2   : > { %v763_v0 = vsel %vm756_vm3, %v1378_v63, 0.0 }
 0x2b3   : > { %764 = vadd.xlane.f32.xlu1 %v763_v0 }
 0x2b9   : > { %v1380_v1 = vpop.eup %1379 }
 0x2ba   : > { %v872_v2 = vsel %vm756_vm3, %v1380_v1, 0.0 }
 0x2bb   : > { %873 = vadd.xlane.f32.xlu1 %v872_v2 }
 0x340   : > { %v765_v10 = vpop.xlane.xlu1 %764 }
 0x341   : > { %1381 = vrcp.f32 %v765_v10 }
 0x348   : > { %v874_v11 = vpop.xlane.xlu1 %873 }
 0x349   : > { %1383 = vrcp.f32 %v874_v11 }
 0x34b   : > { %v1382_v12 = vpop.eup %1381 }
 0x34c   : > { %v767_v14 = vmul.f32 %v1382_v12, %v1378_v63 }
 0x34e   : > { %768 = vst.msk [vmem:[%s1658_s26] sm:$0xff] %vm756_vm3, %v767_v14  ;;  %v769_v15 = vpack.c.bf16 %v767_v14, %v767_v14 }
 0x350   : > { %1271 = vmatmul.mubr.msk.bf16.vlgmr.msra.gmra.mrb[12].mxu1 %vm756_vm3, %v769_v15 }
 0x351   : > { %1281 = vmatpush3.bf16.msra.mxu1 %v883_v16  ;;  %1282 = vmatprep.mubr.msk.bf16.mxu1 %vm1491_vm1, %v1490_v3 }
 0x353   : > { %v1384_v17 = vpop.eup %1383 }
 0x354   : > { %v876_v18 = vmul.f32 %v1384_v17, %v1380_v1 }
 0x356   : > { %v877_v19 = vpack.c.bf16 %v876_v18, %v876_v18 }
 0x358   : > { %1283 = vmatmul.mubr.msk.bf16.vlgmr.msra.gmra.mrb[16].mxu1 %vm756_vm3, %v877_v19 }
 0x423   : > { %v812_v20 = vpop.f32.mrb[12].mxu1 }
 0x424   : > { %925 = vst.msk [vmem:[#allocation2] sm:$0xff] %vm399_vm2, %v812_v20  ;;  %v1272_v21 = vpop.f32.mrb[13].mxu1 }
 0x425   : > { %v815_v22 = vpop.f32.mrb[14].mxu1 }
 0x426   : > { %v1273_v23 = vpop.f32.mrb[15].mxu1 }
 0x428   : > { %930 = sbr.rel (%p1181_p6) target bundleno = 1390 (0x56e), region = 52 }
 0x42b   : > { %v919_v24 = vpop.f32.mrb[16].mxu1  ;;  %v931_v3 = vld [vmem:[#allocation2] sm:$0xff] (!%p1181_p6) }
 0x42c   : > { %926 = vst.msk [vmem:[#allocation2 + $0x8] sm:$0xff] %vm399_vm2, %v919_v24  ;;  %v1284_v25 = vpop.f32.mrb[17].mxu1  ;;  %v935_v29 = vsel (!%p1181_p6), %vm399_vm2, %v931_v3, 0.0 }
 0x42d   : > { %v922_v26 = vpop.f32.mrb[18].mxu1  ;;  %936 = vadd.xlane.f32.xlu0 (!%p1181_p6), %v935_v29 }
 0x42e   : > { %v1285_v27 = vpop.f32.mrb[19].mxu1 }
 0x433   : > { %v932_v28 = vld [vmem:[#allocation2 + $0x8] sm:$0xff] }
 0x434   : > { %v938_v30 = vsel %vm399_vm2, %v932_v28, 0.0 }
 0x435   : > { %939 = vadd.xlane.f32.xlu0 %v938_v30 }
 0x4ba   : > { %v937_v31 = vpop.xlane.xlu0 %936 }
 0x4bb   : > { %v942_v32 = vmul.f32 0.03125, %v937_v31 }
 0x4bd   : > { %v944_v33 = vsub.f32 %v931_v3, %v942_v32 }
 0x4bf   : > { %v946_v36 = vmul.f32 %v944_v33, %v944_v33 }
 0x4c1   : > { %v948_v38 = vsel %vm399_vm2, %v946_v36, 0.0 }
 0x4c2   : > { %v940_v34 = vpop.xlane.xlu0 %939  ;;  %949 = vadd.xlane.f32.xlu1 %v948_v38 }
 0x4c3   : > { %v943_v35 = vmul.f32 0.03125, %v940_v34 }
 0x4c5   : > { %v945_v37 = vsub.f32 %v932_v28, %v943_v35 }
 0x4c7   : > { %v947_v39 = vmul.f32 %v945_v37, %v945_v37 }
 0x4c9   : > { %v951_v40 = vsel %vm399_vm2, %v947_v39, 0.0 }
 0x4ca   : > { %952 = vadd.xlane.f32.xlu1 %v951_v40 }
 0x54f   : > { %v950_v41 = vpop.xlane.xlu1 %949 }
 0x550   : > { %v954_v42 = vmul.f32 0.03125, %v950_v41 }
 0x552   : > { %v956_v43 = vadd.f32 1e-05, %v954_v42 }
 0x554   : > { %1385 = vrsqrt.f32 %v956_v43 }
 0x557   : > { %v953_v44 = vpop.xlane.xlu1 %952 }
 0x558   : > { %v955_v45 = vmul.f32 0.03125, %v953_v44 }
 0x55a   : > { %v957_v46 = vadd.f32 1e-05, %v955_v45 }
 0x55c   : > { %1387 = vrsqrt.f32 %v957_v46 }
 0x55e   : > { %v1386_v47 = vpop.eup %1385 }
 0x55f   : > { %v960_v49 = vmul.f32 %v1386_v47, %v944_v33 }
 0x561   : > { %v968_v51 = vmul.f32 %v1182_v48, %v960_v49 }
 0x563   : > { %v976_v53 = vadd.f32 %v1183_v50, %v968_v51 }
 0x565   : > { %978 = vst.msk [vmem:[%s1648_s9] sm:$0xff] %vm399_vm2, %v976_v53 }
 0x566   : > { %v1388_v52 = vpop.eup %1387 }
 0x567   : > { %v961_v54 = vmul.f32 %v1388_v52, %v945_v37 }
 0x569   : > { %v969_v55 = vmul.f32 %v1182_v48, %v961_v54 }
 0x56b   : > { %v977_v56 = vadd.f32 %v1183_v50, %v969_v55 }
 0x56d   : > { %979 = vst.msk [vmem:[%s1648_s9 + $0x8] sm:$0xff] %vm399_vm2, %v977_v56 }
 0x56e PF: > { %s20_s28 = sadd.s32 1, %s1485_s28   ;;  %s1790_s24 = sld [smem:[#allocation6_spill]] }
 0x56f   : > { %p17_p7 = scmp.ge.s32.totalorder %s20_s28, 6   ;;  %s1791_s25 = sld [smem:[#allocation7_spill]] }
 0x570   : > { %s1792_s26 = sld [smem:[#allocation8_spill]]  ;;  %s1793_s27 = sld [smem:[#allocation9_spill]] }
 0x571   : > { %s1794_s21 = smov %s1461_s22  ;;  %s1795_s22 = smov %s1465_s23 }
 0x572   : > { %s1796_s23 = smov %s1581_s10  ;;  %19 = sbr.rel (!%p17_p7) target bundleno = 7 (0x7), region = 110 }
 0x579   :  { %1023 = vsyncpa [#allocation4], 1 }
 0x57a   :  { %1025 = vsyncpa [#allocation4 + $0x1], 1 }

</bundles_post_ra>
